<compile_context>
chip_gen: v5e
topology: v5e:2x2
jax: 0.10.0
libtpu: 0.0.40
codegen_flags: <defaults>
</compile_context>

<pallas_src>
import functools

import jax
import jax.numpy as jnp
from jax.experimental import pallas as pl
from jax.experimental.pallas import tpu as pltpu


# ----------------------------------------------------------------------------
# In-kernel LSTM cell math (f32)
# ----------------------------------------------------------------------------
def _lstm_cell(gates, c, H):
    """gates: (B, 4H) f32 pre-activations in (i, f, g, o) order; c: (B, H) f32."""
    i_g = jax.nn.sigmoid(gates[:, 0 * H:1 * H])
    f_g = jax.nn.sigmoid(gates[:, 1 * H:2 * H])
    g_g = jnp.tanh(gates[:, 2 * H:3 * H])
    o_g = jax.nn.sigmoid(gates[:, 3 * H:4 * H])
    c_new = f_g * c + i_g * g_g
    h_new = o_g * jnp.tanh(c_new)
    return h_new, c_new


# ----------------------------------------------------------------------------
# Fused prefill kernel: all layers + FC head, grid over time blocks
# ----------------------------------------------------------------------------
def _make_prefill_kernel(num_layers, seq_len, block_t, hidden):
    need_mask = (seq_len % block_t) != 0
    n_in = 2 + 2 * (num_layers - 1) + 2   # gx0, whh0, (wcat,b)*(L-1), wfc, bfc

    def kernel(*args):
        in_refs = args[:n_in]
        out_ref, hn_ref, cn_ref = args[n_in:n_in + 3]
        h_sc, c_sc = args[n_in + 3:]

        gx0_ref = in_refs[0]                     # (block_t, B, 4H) precomputed x-gates (+bias), layer 0
        whh0_ref = in_refs[1]                    # (H, 4H)
        rest = in_refs[2:2 + 2 * (num_layers - 1)]
        wfc_ref, bfc_ref = in_refs[-2], in_refs[-1]

        blk = pl.program_id(0)
        H = hidden
        B = h_sc.shape[1]

        @pl.when(blk == 0)
        def _():
            h_sc[...] = jnp.zeros_like(h_sc)
            c_sc[...] = jnp.zeros_like(c_sc)

        # Load recurrent state into registers for the whole time block.
        hs = [h_sc[l] for l in range(num_layers)]
        cs = [c_sc[l] for l in range(num_layers)]

        # Hoisted bias broadcasts for layers >= 1 (broadcast_in_dim is not CSE'd).
        biases = [jnp.broadcast_to(rest[2 * (l - 1) + 1][...], (B, 4 * H))
                  for l in range(1, num_layers)]

        for tt in range(block_t):
            if need_mask:
                valid = (blk * block_t + tt) < seq_len

            # ---- layer 0: input projection precomputed, only h @ W_hh here
            gates = gx0_ref[tt].astype(jnp.float32) + jnp.dot(
                hs[0], whh0_ref[...], preferred_element_type=jnp.float32)
            h_new, c_new = _lstm_cell(gates, cs[0], H)
            if need_mask:
                h_new = jnp.where(valid, h_new, hs[0])
                c_new = jnp.where(valid, c_new, cs[0])
            hs[0], cs[0] = h_new, c_new
            x_l = h_new

            # ---- layers 1..L-1: single fused matmul concat([x, h]) @ [Wih; Whh]
            for l in range(1, num_layers):
                wcat_ref = rest[2 * (l - 1)]     # (2H, 4H)
                xh = jnp.concatenate([x_l, hs[l]], axis=-1)
                gates = jnp.dot(xh, wcat_ref[...],
                                preferred_element_type=jnp.float32) + biases[l - 1]
                h_new, c_new = _lstm_cell(gates, cs[l], H)
                if need_mask:
                    h_new = jnp.where(valid, h_new, hs[l])
                    c_new = jnp.where(valid, c_new, cs[l])
                hs[l], cs[l] = h_new, c_new
                x_l = h_new

        # Write carried state back to VMEM scratch once per grid step.
        for l in range(num_layers):
            h_sc[l] = hs[l]
            c_sc[l] = cs[l]

        # ---- last grid step: FC head + final-state writeback
        @pl.when(blk == pl.num_programs(0) - 1)
        def _():
            h_top = hs[num_layers - 1]
            out_ref[...] = (jnp.dot(h_top, wfc_ref[...],
                                    preferred_element_type=jnp.float32)
                            + bfc_ref[...]).astype(out_ref.dtype)
            hn_ref[...] = h_sc[...].astype(hn_ref.dtype)
            cn_ref[...] = c_sc[...].astype(cn_ref.dtype)

    return kernel


# ----------------------------------------------------------------------------
# Fused autoregressive decode kernel: single grid step, output resident in VMEM
# ----------------------------------------------------------------------------
def _make_decode_kernel(num_layers, hidden, future_num, unroll_limit=32):
    n_in = 3 + 2 * num_layers + 2   # x0, hn, cn, (wcat, b)*L, wfc, bfc

    def kernel(*args):
        in_refs = args[:n_in]
        outs_ref = args[n_in]
        h_sc, c_sc, x_sc = args[n_in + 1:]

        x0_ref, hn_ref, cn_ref = in_refs[0], in_refs[1], in_refs[2]
        layer_refs = in_refs[3:3 + 2 * num_layers]
        wfc_ref, bfc_ref = in_refs[-2], in_refs[-1]

        H = hidden
        B = x0_ref.shape[0]
        O = bfc_ref.shape[-1]

        # Hoisted bias broadcasts (loop-invariant).
        biases = [jnp.broadcast_to(layer_refs[2 * l + 1][...], (B, 4 * H))
                  for l in range(num_layers)]
        bfc_b = jnp.broadcast_to(bfc_ref[...], (B, O))

        def one_step(x, hs, cs):
            x_l = x
            new_hs, new_cs = [], []
            for l in range(num_layers):
                wcat_ref = layer_refs[2 * l]     # (D+H, 4H) for l==0 else (2H, 4H)
                xh = jnp.concatenate([x_l, hs[l]], axis=-1)
                gates = jnp.dot(xh, wcat_ref[...],
                                preferred_element_type=jnp.float32) + biases[l]
                h_new, c_new = _lstm_cell(gates, cs[l], H)
                new_hs.append(h_new)
                new_cs.append(c_new)
                x_l = h_new
            out = jnp.dot(x_l, wfc_ref[...],
                          preferred_element_type=jnp.float32) + bfc_b
            return out, new_hs, new_cs

        if future_num <= unroll_limit:
            # Fully unrolled: state lives in vregs, no scratch traffic at all.
            hs = [hn_ref[l].astype(jnp.float32) for l in range(num_layers)]
            cs = [cn_ref[l].astype(jnp.float32) for l in range(num_layers)]
            x = x0_ref[...].astype(jnp.float32)
            for s in range(future_num):
                x, hs, cs = one_step(x, hs, cs)
                outs_ref[s] = x.astype(outs_ref.dtype)   # O == D feedback
        else:
            # Long horizons: carry state through VMEM scratch with pl.loop.
            h_sc[...] = hn_ref[...].astype(jnp.float32)
            c_sc[...] = cn_ref[...].astype(jnp.float32)
            x_sc[...] = x0_ref[...].astype(jnp.float32)

            @pl.loop(0, future_num)
            def _(s):
                hs = [h_sc[l] for l in range(num_layers)]
                cs = [c_sc[l] for l in range(num_layers)]
                out, hs, cs = one_step(x_sc[...], hs, cs)
                for l in range(num_layers):
                    h_sc[l] = hs[l]
                    c_sc[l] = cs[l]
                x_sc[...] = out
                outs_ref[s] = out.astype(outs_ref.dtype)

    return kernel


# ----------------------------------------------------------------------------
# Parameters (mirrors nn.LSTM / nn.Linear shapes)
# ----------------------------------------------------------------------------
def init_params(key, input_size, hidden_size, output_size, num_layers,
                dtype=jnp.float32):
    params = {"layers": []}
    k = 1.0 / jnp.sqrt(hidden_size)
    for l in range(num_layers):
        d_in = input_size if l == 0 else hidden_size
        key, k1, k2, k3, k4 = jax.random.split(key, 5)
        w_ih = jax.random.uniform(k1, (4 * hidden_size, d_in), dtype, -k, k)
        w_hh = jax.random.uniform(k2, (4 * hidden_size, hidden_size), dtype, -k, k)
        b_ih = jax.random.uniform(k3, (4 * hidden_size,), dtype, -k, k)
        b_hh = jax.random.uniform(k4, (4 * hidden_size,), dtype, -k, k)
        params["layers"].append({
            "w_ih_t": w_ih.T,                        # (d_in, 4H)
            "w_hh_t": w_hh.T,                        # (H, 4H)
            "bias": (b_ih + b_hh)[None, :],          # (1, 4H)
        })
    key, k5, k6 = jax.random.split(key, 3)
    kf = 1.0 / jnp.sqrt(hidden_size)
    w_fc = jax.random.uniform(k5, (output_size, hidden_size), dtype, -kf, kf)
    b_fc = jax.random.uniform(k6, (output_size,), dtype, -kf, kf)
    params["w_fc_t"] = w_fc.T                        # (H, O)
    params["b_fc"] = b_fc[None, :]                   # (1, O)
    return params


# ----------------------------------------------------------------------------
# Forward wrapper (equivalent of LSTM.forward(x, future_num), batch_first)
# ----------------------------------------------------------------------------
def lstm_model_forward(x, params, hidden_size, num_layers, future_num=0,
                       block_t=32):
    B, T, D = x.shape
    H = hidden_size
    O = params["w_fc_t"].shape[-1]
    dt = x.dtype
    layers = params["layers"]

    w_ih0_t = layers[0]["w_ih_t"]                    # (D, 4H)
    w_hh0_t = layers[0]["w_hh_t"]                    # (H, 4H)
    bias0 = layers[0]["bias"]                        # (1, 4H)

    # Hoisted layer-0 input projection: one big matmul over all T*B rows.
    x_tbd = jnp.transpose(x, (1, 0, 2))              # (T, B, D), time-major
    gx0 = (x_tbd.reshape(T * B, D) @ w_ih0_t + bias0).reshape(T, B, 4 * H)
    gx0 = gx0.astype(jnp.float32)

    bt = min(block_t, T)
    n_blocks = pl.cdiv(T, bt)
    t_pad = n_blocks * bt
    if t_pad != T:
        gx0 = jnp.pad(gx0, ((0, t_pad - T), (0, 0), (0, 0)))

    # Fused [W_ih; W_hh] weights for layers >= 1.
    wcat_rest, bias_rest = [], []
    for lp in layers[1:]:
        wcat_rest.append(jnp.concatenate([lp["w_ih_t"], lp["w_hh_t"]], axis=0))
        bias_rest.append(lp["bias"])

    # ---------------- prefill: all layers + FC head, one pallas_call ----------
    in_specs = [
        pl.BlockSpec((bt, B, 4 * H), lambda i: (i, 0, 0)),
        pl.BlockSpec((H, 4 * H), lambda i: (0, 0)),
    ]
    inputs = [gx0, w_hh0_t]
    for wc, bb in zip(wcat_rest, bias_rest):
        in_specs.append(pl.BlockSpec((2 * H, 4 * H), lambda i: (0, 0)))
        in_specs.append(pl.BlockSpec((1, 4 * H), lambda i: (0, 0)))
        inputs += [wc, bb]
    in_specs.append(pl.BlockSpec((H, O), lambda i: (0, 0)))
    in_specs.append(pl.BlockSpec((1, O), lambda i: (0, 0)))
    inputs += [params["w_fc_t"], params["b_fc"]]

    out0, hn, cn = pl.pallas_call(
        _make_prefill_kernel(num_layers, T, bt, H),
        out_shape=(
            jax.ShapeDtypeStruct((B, O), dt),
            jax.ShapeDtypeStruct((num_layers, B, H), dt),
            jax.ShapeDtypeStruct((num_layers, B, H), dt),
        ),
        grid_spec=pltpu.PrefetchScalarGridSpec(
            num_scalar_prefetch=0,
            grid=(n_blocks,),
            in_specs=in_specs,
            out_specs=[
                pl.BlockSpec((B, O), lambda i: (0, 0)),
                pl.BlockSpec((num_layers, B, H), lambda i: (0, 0, 0)),
                pl.BlockSpec((num_layers, B, H), lambda i: (0, 0, 0)),
            ],
            scratch_shapes=[
                pltpu.VMEM((num_layers, B, H), jnp.float32),
                pltpu.VMEM((num_layers, B, H), jnp.float32),
            ],
        ),
        compiler_params=pltpu.CompilerParams(
            dimension_semantics=("arbitrary",)),
    )(*inputs)

    if future_num == 0:
        return out0

    # ---------------- decode: all future steps in one grid step ---------------
    assert O == D, "autoregressive decode requires output_size == input_size"
    wcat0_dec = jnp.concatenate([w_ih0_t, w_hh0_t], axis=0)   # (D+H, 4H)

    in_specs = [
        pl.BlockSpec((B, O), lambda t: (0, 0)),
        pl.BlockSpec((num_layers, B, H), lambda t: (0, 0, 0)),
        pl.BlockSpec((num_layers, B, H), lambda t: (0, 0, 0)),
        pl.BlockSpec((D + H, 4 * H), lambda t: (0, 0)),
        pl.BlockSpec((1, 4 * H), lambda t: (0, 0)),
    ]
    inputs = [out0, hn, cn, wcat0_dec, bias0]
    for wc, bb in zip(wcat_rest, bias_rest):
        in_specs.append(pl.BlockSpec((2 * H, 4 * H), lambda t: (0, 0)))
        in_specs.append(pl.BlockSpec((1, 4 * H), lambda t: (0, 0)))
        inputs += [wc, bb]
    in_specs.append(pl.BlockSpec((H, O), lambda t: (0, 0)))
    in_specs.append(pl.BlockSpec((1, O), lambda t: (0, 0)))
    inputs += [params["w_fc_t"], params["b_fc"]]

    outs = pl.pallas_call(
        _make_decode_kernel(num_layers, H, future_num),
        out_shape=jax.ShapeDtypeStruct((future_num, B, O), dt),
        grid_spec=pltpu.PrefetchScalarGridSpec(
            num_scalar_prefetch=0,
            grid=(1,),
            in_specs=in_specs,
            out_specs=pl.BlockSpec((future_num, B, O), lambda t: (0, 0, 0)),
            scratch_shapes=[
                pltpu.VMEM((num_layers, B, H), jnp.float32),
                pltpu.VMEM((num_layers, B, H), jnp.float32),
                pltpu.VMEM((B, O), jnp.float32),
            ],
        ),
        compiler_params=pltpu.CompilerParams(
            dimension_semantics=("arbitrary",)),
    )(*inputs)

    return jnp.concatenate(
        [out0[:, None, :], jnp.transpose(outs, (1, 0, 2))], axis=1)


# ----------------------------------------------------------------------------
# Pure-JAX reference (for correctness check)
# ----------------------------------------------------------------------------
def _ref_forward(x, params, hidden_size, num_layers, future_num=0):
    B = x.shape[0]
    H = hidden_size

    def run_layer(seq, lp, h, c):
        def step(carry, x_t):
            h, c = carry
            g = x_t @ lp["w_ih_t"] + h @ lp["w_hh_t"] + lp["bias"]
            i = jax.nn.sigmoid(g[:, :H])
            f = jax.nn.sigmoid(g[:, H:2 * H])
            gg = jnp.tanh(g[:, 2 * H:3 * H])
            o = jax.nn.sigmoid(g[:, 3 * H:])
            c = f * c + i * gg
            h = o * jnp.tanh(c)
            return (h, c), h
        (h, c), out = jax.lax.scan(step, (h, c), seq)
        return out, h, c

    def run_stack(seq, hs, cs):
        new_hs, new_cs = [], []
        for lp, h, c in zip(params["layers"], hs, cs):
            seq, h, c = run_layer(seq, lp, h, c)
            new_hs.append(h)
            new_cs.append(c)
        return seq[-1], new_hs, new_cs

    hs = [jnp.zeros((B, H), x.dtype) for _ in range(num_layers)]
    cs = [jnp.zeros((B, H), x.dtype) for _ in range(num_layers)]
    h_top, hs, cs = run_stack(jnp.transpose(x, (1, 0, 2)), hs, cs)
    out = h_top @ params["w_fc_t"] + params["b_fc"]
    outs = [out]
    for _ in range(future_num):
        h_top, hs, cs = run_stack(out[None], hs, cs)
        out = h_top @ params["w_fc_t"] + params["b_fc"]
        outs.append(out)
    return jnp.stack(outs, axis=1) if future_num > 0 else outs[0]


# ----------------------------------------------------------------------------
if __name__ == "__main__":
    input_size, hidden_size, output_size, num_layers = 4, 32, 4, 2
    B, T = 2, 8

    key = jax.random.PRNGKey(0)
    kx, kp = jax.random.split(key)
    x = jax.random.normal(kx, (B, T, input_size), jnp.float32)
    params = init_params(kp, input_size, hidden_size, output_size, num_layers)

    # future_num = 0 path
    fwd0 = jax.jit(functools.partial(lstm_model_forward, hidden_size=hidden_size,
                                     num_layers=num_layers, future_num=0))
    out = jax.block_until_ready(fwd0(x, params))
    ref = jax.block_until_ready(
        _ref_forward(x, params, hidden_size, num_layers, future_num=0))
    assert out.shape == (B, output_size)
    assert jnp.allclose(out, ref, atol=1e-4, rtol=1e-4), \
        float(jnp.max(jnp.abs(out - ref)))

    # autoregressive decode path (output_size == input_size, as in PyTorch)
    future_steps = 3
    fwdN = jax.jit(functools.partial(lstm_model_forward, hidden_size=hidden_size,
                                     num_layers=num_layers,
                                     future_num=future_steps))
    out_f = jax.block_until_ready(fwdN(x, params))
    ref_f = jax.block_until_ready(
        _ref_forward(x, params, hidden_size, num_layers,
                     future_num=future_steps))
    assert out_f.shape == (B, future_steps + 1, output_size)
    assert jnp.allclose(out_f, ref_f, atol=1e-4, rtol=1e-4), \
        float(jnp.max(jnp.abs(out_f - ref_f)))

    print("KERNEL_OK")
</pallas_src>

<mosaic_0001>
module attributes {stable_mosaic.version = 11 : i64} {
  func.func @kernel(%arg0: i32, %arg1: memref<8x2x128xf32, #tpu.memory_space<vmem>>, %arg2: memref<32x128xf32, #tpu.memory_space<vmem>>, %arg3: memref<64x128xf32, #tpu.memory_space<vmem>>, %arg4: memref<1x128xf32, #tpu.memory_space<vmem>>, %arg5: memref<32x4xf32, #tpu.memory_space<vmem>>, %arg6: memref<1x4xf32, #tpu.memory_space<vmem>>, %arg7: memref<2x4xf32, #tpu.memory_space<vmem>>, %arg8: memref<2x2x32xf32, #tpu.memory_space<vmem>>, %arg9: memref<2x2x32xf32, #tpu.memory_space<vmem>>, %arg10: memref<2x2x32xf32, #tpu.memory_space<vmem>>, %arg11: memref<2x2x32xf32, #tpu.memory_space<vmem>>) attributes {dimension_semantics = [#tpu.dimension_semantics<arbitrary>], iteration_bounds = array<i64: 1>, scalar_prefetch = 0 : i64, scratch_operands = 2 : i64, tpu.core_type = #tpu.core_type<tc>, window_params = [{transform_indices = @transform_0, window_bounds = array<i64: 8, 2, 128>}, {pipeline_mode = #tpu.pipeline_mode<synchronous>, transform_indices = @transform_1, window_bounds = array<i64: 32, 128>}, {pipeline_mode = #tpu.pipeline_mode<synchronous>, transform_indices = @transform_2, window_bounds = array<i64: 64, 128>}, {pipeline_mode = #tpu.pipeline_mode<synchronous>, transform_indices = @transform_3, window_bounds = array<i64: 1, 128>}, {pipeline_mode = #tpu.pipeline_mode<synchronous>, transform_indices = @transform_4, window_bounds = array<i64: 32, 4>}, {pipeline_mode = #tpu.pipeline_mode<synchronous>, transform_indices = @transform_5, window_bounds = array<i64: 1, 4>}, {pipeline_mode = #tpu.pipeline_mode<synchronous>, transform_indices = @transform_6, window_bounds = array<i64: 2, 4>}, {pipeline_mode = #tpu.pipeline_mode<synchronous>, transform_indices = @transform_7, window_bounds = array<i64: 2, 2, 32>}, {pipeline_mode = #tpu.pipeline_mode<synchronous>, transform_indices = @transform_8, window_bounds = array<i64: 2, 2, 32>}]} {
    %c0_i32 = arith.constant 0 : i32
    %0 = arith.cmpi eq, %arg0, %c0_i32 : i32
    %1 = arith.extui %0 : i1 to i32
    %c0_i32_0 = arith.constant 0 : i32
    %2 = arith.cmpi ne, %1, %c0_i32_0 : i32
    scf.if %2 {
      %cst_140 = arith.constant 0.000000e+00 : f32
      %501 = vector.broadcast %cst_140 : f32 to vector<2x2x32xf32>
      %c0_141 = arith.constant 0 : index
      %c0_142 = arith.constant 0 : index
      %c0_143 = arith.constant 0 : index
      %502 = vector.load %arg10[%c0_141, %c0_142, %c0_143] : memref<2x2x32xf32, #tpu.memory_space<vmem>>, vector<2x2x32xf32>
      tpu.vector_store %arg10[%c0_141, %c0_142, %c0_143], %501 {strides = array<i32>} : memref<2x2x32xf32, #tpu.memory_space<vmem>>, vector<2x2x32xf32>,
      %cst_144 = arith.constant 0.000000e+00 : f32
      %503 = vector.broadcast %cst_144 : f32 to vector<2x2x32xf32>
      %c0_145 = arith.constant 0 : index
      %c0_146 = arith.constant 0 : index
      %c0_147 = arith.constant 0 : index
      %504 = vector.load %arg11[%c0_145, %c0_146, %c0_147] : memref<2x2x32xf32, #tpu.memory_space<vmem>>, vector<2x2x32xf32>
      tpu.vector_store %arg11[%c0_145, %c0_146, %c0_147], %503 {strides = array<i32>} : memref<2x2x32xf32, #tpu.memory_space<vmem>>, vector<2x2x32xf32>,
    } else {
    }
    %c0 = arith.constant 0 : index
    %c0_1 = arith.constant 0 : index
    %c0_2 = arith.constant 0 : index
    %3 = vector.load %arg10[%c0, %c0_1, %c0_2] : memref<2x2x32xf32, #tpu.memory_space<vmem>>, vector<1x2x32xf32>
    %4 = vector.shape_cast %3 : vector<1x2x32xf32> to vector<2x32xf32>
    %c1 = arith.constant 1 : index
    %c0_3 = arith.constant 0 : index
    %c0_4 = arith.constant 0 : index
    %5 = vector.load %arg10[%c1, %c0_3, %c0_4] : memref<2x2x32xf32, #tpu.memory_space<vmem>>, vector<1x2x32xf32>
    %6 = vector.shape_cast %5 : vector<1x2x32xf32> to vector<2x32xf32>
    %c0_5 = arith.constant 0 : index
    %c0_6 = arith.constant 0 : index
    %c0_7 = arith.constant 0 : index
    %7 = vector.load %arg11[%c0_5, %c0_6, %c0_7] : memref<2x2x32xf32, #tpu.memory_space<vmem>>, vector<1x2x32xf32>
    %8 = vector.shape_cast %7 : vector<1x2x32xf32> to vector<2x32xf32>
    %c1_8 = arith.constant 1 : index
    %c0_9 = arith.constant 0 : index
    %c0_10 = arith.constant 0 : index
    %9 = vector.load %arg11[%c1_8, %c0_9, %c0_10] : memref<2x2x32xf32, #tpu.memory_space<vmem>>, vector<1x2x32xf32>
    %10 = vector.shape_cast %9 : vector<1x2x32xf32> to vector<2x32xf32>
    %c0_11 = arith.constant 0 : index
    %c0_12 = arith.constant 0 : index
    %11 = vector.load %arg4[%c0_11, %c0_12] : memref<1x128xf32, #tpu.memory_space<vmem>>, vector<1x128xf32>
    %12 = vector.shape_cast %11 : vector<1x128xf32> to vector<1x128xf32>
    %13 = vector.broadcast %12 : vector<1x128xf32> to vector<2x128xf32>
    %c0_13 = arith.constant 0 : index
    %c0_14 = arith.constant 0 : index
    %c0_15 = arith.constant 0 : index
    %14 = vector.load %arg1[%c0_13, %c0_14, %c0_15] : memref<8x2x128xf32, #tpu.memory_space<vmem>>, vector<1x2x128xf32>
    %15 = vector.shape_cast %14 : vector<1x2x128xf32> to vector<2x128xf32>
    %c0_16 = arith.constant 0 : index
    %c0_17 = arith.constant 0 : index
    %16 = vector.load %arg2[%c0_16, %c0_17] : memref<32x128xf32, #tpu.memory_space<vmem>>, vector<32x128xf32>
    %cst = arith.constant dense<0.000000e+00> : vector<2x128xf32>
    %17 = tpu.matmul %4, %16, %cst {dimension_numbers = #tpu.dot_dimension_numbers<[1], [0], [0], [1], [0, 0, 1, 1], [], []>} : vector<2x32xf32>, vector<32x128xf32>, vector<2x128xf32> -> vector<2x128xf32>
    %18 = arith.addf %15, %17 : vector<2x128xf32>
    %19 = vector.extract_strided_slice %18 {offsets = [0, 0], sizes = [2, 32], strides = [1, 1]} : vector<2x128xf32> to vector<2x32xf32>
    %20 = arith.negf %19 : vector<2x32xf32>
    %21 = math.exp %20 : vector<2x32xf32>
    %cst_18 = arith.constant 1.000000e+00 : f32
    %22 = vector.broadcast %cst_18 : f32 to vector<2x32xf32>
    %23 = arith.addf %22, %21 : vector<2x32xf32>
    %24 = arith.divf %22, %23 : vector<2x32xf32>
    %25 = vector.extract_strided_slice %18 {offsets = [0, 32], sizes = [2, 32], strides = [1, 1]} : vector<2x128xf32> to vector<2x32xf32>
    %26 = arith.negf %25 : vector<2x32xf32>
    %27 = math.exp %26 : vector<2x32xf32>
    %cst_19 = arith.constant 1.000000e+00 : f32
    %28 = vector.broadcast %cst_19 : f32 to vector<2x32xf32>
    %29 = arith.addf %28, %27 : vector<2x32xf32>
    %30 = arith.divf %28, %29 : vector<2x32xf32>
    %31 = vector.extract_strided_slice %18 {offsets = [0, 64], sizes = [2, 32], strides = [1, 1]} : vector<2x128xf32> to vector<2x32xf32>
    %32 = math.tanh %31 : vector<2x32xf32>
    %33 = vector.extract_strided_slice %18 {offsets = [0, 96], sizes = [2, 32], strides = [1, 1]} : vector<2x128xf32> to vector<2x32xf32>
    %34 = arith.negf %33 : vector<2x32xf32>
    %35 = math.exp %34 : vector<2x32xf32>
    %cst_20 = arith.constant 1.000000e+00 : f32
    %36 = vector.broadcast %cst_20 : f32 to vector<2x32xf32>
    %37 = arith.addf %36, %35 : vector<2x32xf32>
    %38 = arith.divf %36, %37 : vector<2x32xf32>
    %39 = arith.mulf %30, %8 : vector<2x32xf32>
    %40 = arith.mulf %24, %32 : vector<2x32xf32>
    %41 = arith.addf %39, %40 : vector<2x32xf32>
    %42 = math.tanh %41 : vector<2x32xf32>
    %43 = arith.mulf %38, %42 : vector<2x32xf32>
    %44 = tpu.concatenate %43, %6 in 1 : vector<2x32xf32>, vector<2x32xf32> -> vector<2x64xf32>
    %c0_21 = arith.constant 0 : index
    %c0_22 = arith.constant 0 : index
    %45 = vector.load %arg3[%c0_21, %c0_22] : memref<64x128xf32, #tpu.memory_space<vmem>>, vector<64x128xf32>
    %cst_23 = arith.constant dense<0.000000e+00> : vector<2x128xf32>
    %46 = tpu.matmul %44, %45, %cst_23 {dimension_numbers = #tpu.dot_dimension_numbers<[1], [0], [0], [1], [0, 0, 1, 1], [], []>} : vector<2x64xf32>, vector<64x128xf32>, vector<2x128xf32> -> vector<2x128xf32>
    %47 = arith.addf %46, %13 : vector<2x128xf32>
    %48 = vector.extract_strided_slice %47 {offsets = [0, 0], sizes = [2, 32], strides = [1, 1]} : vector<2x128xf32> to vector<2x32xf32>
    %49 = arith.negf %48 : vector<2x32xf32>
    %50 = math.exp %49 : vector<2x32xf32>
    %cst_24 = arith.constant 1.000000e+00 : f32
    %51 = vector.broadcast %cst_24 : f32 to vector<2x32xf32>
    %52 = arith.addf %51, %50 : vector<2x32xf32>
    %53 = arith.divf %51, %52 : vector<2x32xf32>
    %54 = vector.extract_strided_slice %47 {offsets = [0, 32], sizes = [2, 32], strides = [1, 1]} : vector<2x128xf32> to vector<2x32xf32>
    %55 = arith.negf %54 : vector<2x32xf32>
    %56 = math.exp %55 : vector<2x32xf32>
    %cst_25 = arith.constant 1.000000e+00 : f32
    %57 = vector.broadcast %cst_25 : f32 to vector<2x32xf32>
    %58 = arith.addf %57, %56 : vector<2x32xf32>
    %59 = arith.divf %57, %58 : vector<2x32xf32>
    %60 = vector.extract_strided_slice %47 {offsets = [0, 64], sizes = [2, 32], strides = [1, 1]} : vector<2x128xf32> to vector<2x32xf32>
    %61 = math.tanh %60 : vector<2x32xf32>
    %62 = vector.extract_strided_slice %47 {offsets = [0, 96], sizes = [2, 32], strides = [1, 1]} : vector<2x128xf32> to vector<2x32xf32>
    %63 = arith.negf %62 : vector<2x32xf32>
    %64 = math.exp %63 : vector<2x32xf32>
    %cst_26 = arith.constant 1.000000e+00 : f32
    %65 = vector.broadcast %cst_26 : f32 to vector<2x32xf32>
    %66 = arith.addf %65, %64 : vector<2x32xf32>
    %67 = arith.divf %65, %66 : vector<2x32xf32>
    %68 = arith.mulf %59, %10 : vector<2x32xf32>
    %69 = arith.mulf %53, %61 : vector<2x32xf32>
    %70 = arith.addf %68, %69 : vector<2x32xf32>
    %71 = math.tanh %70 : vector<2x32xf32>
    %72 = arith.mulf %67, %71 : vector<2x32xf32>
    %c1_27 = arith.constant 1 : index
    %c0_28 = arith.constant 0 : index
    %c0_29 = arith.constant 0 : index
    %73 = vector.load %arg1[%c1_27, %c0_28, %c0_29] : memref<8x2x128xf32, #tpu.memory_space<vmem>>, vector<1x2x128xf32>
    %74 = vector.shape_cast %73 : vector<1x2x128xf32> to vector<2x128xf32>
    %c0_30 = arith.constant 0 : index
    %c0_31 = arith.constant 0 : index
    %75 = vector.load %arg2[%c0_30, %c0_31] : memref<32x128xf32, #tpu.memory_space<vmem>>, vector<32x128xf32>
    %cst_32 = arith.constant dense<0.000000e+00> : vector<2x128xf32>
    %76 = tpu.matmul %43, %75, %cst_32 {dimension_numbers = #tpu.dot_dimension_numbers<[1], [0], [0], [1], [0, 0, 1, 1], [], []>} : vector<2x32xf32>, vector<32x128xf32>, vector<2x128xf32> -> vector<2x128xf32>
    %77 = arith.addf %74, %76 : vector<2x128xf32>
    %78 = vector.extract_strided_slice %77 {offsets = [0, 0], sizes = [2, 32], strides = [1, 1]} : vector<2x128xf32> to vector<2x32xf32>
    %79 = arith.negf %78 : vector<2x32xf32>
    %80 = math.exp %79 : vector<2x32xf32>
    %cst_33 = arith.constant 1.000000e+00 : f32
    %81 = vector.broadcast %cst_33 : f32 to vector<2x32xf32>
    %82 = arith.addf %81, %80 : vector<2x32xf32>
    %83 = arith.divf %81, %82 : vector<2x32xf32>
    %84 = vector.extract_strided_slice %77 {offsets = [0, 32], sizes = [2, 32], strides = [1, 1]} : vector<2x128xf32> to vector<2x32xf32>
    %85 = arith.negf %84 : vector<2x32xf32>
    %86 = math.exp %85 : vector<2x32xf32>
    %cst_34 = arith.constant 1.000000e+00 : f32
    %87 = vector.broadcast %cst_34 : f32 to vector<2x32xf32>
    %88 = arith.addf %87, %86 : vector<2x32xf32>
    %89 = arith.divf %87, %88 : vector<2x32xf32>
    %90 = vector.extract_strided_slice %77 {offsets = [0, 64], sizes = [2, 32], strides = [1, 1]} : vector<2x128xf32> to vector<2x32xf32>
    %91 = math.tanh %90 : vector<2x32xf32>
    %92 = vector.extract_strided_slice %77 {offsets = [0, 96], sizes = [2, 32], strides = [1, 1]} : vector<2x128xf32> to vector<2x32xf32>
    %93 = arith.negf %92 : vector<2x32xf32>
    %94 = math.exp %93 : vector<2x32xf32>
    %cst_35 = arith.constant 1.000000e+00 : f32
    %95 = vector.broadcast %cst_35 : f32 to vector<2x32xf32>
    %96 = arith.addf %95, %94 : vector<2x32xf32>
    %97 = arith.divf %95, %96 : vector<2x32xf32>
    %98 = arith.mulf %89, %41 : vector<2x32xf32>
    %99 = arith.mulf %83, %91 : vector<2x32xf32>
    %100 = arith.addf %98, %99 : vector<2x32xf32>
    %101 = math.tanh %100 : vector<2x32xf32>
    %102 = arith.mulf %97, %101 : vector<2x32xf32>
    %103 = tpu.concatenate %102, %72 in 1 : vector<2x32xf32>, vector<2x32xf32> -> vector<2x64xf32>
    %c0_36 = arith.constant 0 : index
    %c0_37 = arith.constant 0 : index
    %104 = vector.load %arg3[%c0_36, %c0_37] : memref<64x128xf32, #tpu.memory_space<vmem>>, vector<64x128xf32>
    %cst_38 = arith.constant dense<0.000000e+00> : vector<2x128xf32>
    %105 = tpu.matmul %103, %104, %cst_38 {dimension_numbers = #tpu.dot_dimension_numbers<[1], [0], [0], [1], [0, 0, 1, 1], [], []>} : vector<2x64xf32>, vector<64x128xf32>, vector<2x128xf32> -> vector<2x128xf32>
    %106 = arith.addf %105, %13 : vector<2x128xf32>
    %107 = vector.extract_strided_slice %106 {offsets = [0, 0], sizes = [2, 32], strides = [1, 1]} : vector<2x128xf32> to vector<2x32xf32>
    %108 = arith.negf %107 : vector<2x32xf32>
    %109 = math.exp %108 : vector<2x32xf32>
    %cst_39 = arith.constant 1.000000e+00 : f32
    %110 = vector.broadcast %cst_39 : f32 to vector<2x32xf32>
    %111 = arith.addf %110, %109 : vector<2x32xf32>
    %112 = arith.divf %110, %111 : vector<2x32xf32>
    %113 = vector.extract_strided_slice %106 {offsets = [0, 32], sizes = [2, 32], strides = [1, 1]} : vector<2x128xf32> to vector<2x32xf32>
    %114 = arith.negf %113 : vector<2x32xf32>
    %115 = math.exp %114 : vector<2x32xf32>
    %cst_40 = arith.constant 1.000000e+00 : f32
    %116 = vector.broadcast %cst_40 : f32 to vector<2x32xf32>
    %117 = arith.addf %116, %115 : vector<2x32xf32>
    %118 = arith.divf %116, %117 : vector<2x32xf32>
    %119 = vector.extract_strided_slice %106 {offsets = [0, 64], sizes = [2, 32], strides = [1, 1]} : vector<2x128xf32> to vector<2x32xf32>
    %120 = math.tanh %119 : vector<2x32xf32>
    %121 = vector.extract_strided_slice %106 {offsets = [0, 96], sizes = [2, 32], strides = [1, 1]} : vector<2x128xf32> to vector<2x32xf32>
    %122 = arith.negf %121 : vector<2x32xf32>
    %123 = math.exp %122 : vector<2x32xf32>
    %cst_41 = arith.constant 1.000000e+00 : f32
    %124 = vector.broadcast %cst_41 : f32 to vector<2x32xf32>
    %125 = arith.addf %124, %123 : vector<2x32xf32>
    %126 = arith.divf %124, %125 : vector<2x32xf32>
    %127 = arith.mulf %118, %70 : vector<2x32xf32>
    %128 = arith.mulf %112, %120 : vector<2x32xf32>
    %129 = arith.addf %127, %128 : vector<2x32xf32>
    %130 = math.tanh %129 : vector<2x32xf32>
    %131 = arith.mulf %126, %130 : vector<2x32xf32>
    %c2 = arith.constant 2 : index
    %c0_42 = arith.constant 0 : index
    %c0_43 = arith.constant 0 : index
    %132 = vector.load %arg1[%c2, %c0_42, %c0_43] : memref<8x2x128xf32, #tpu.memory_space<vmem>>, vector<1x2x128xf32>
    %133 = vector.shape_cast %132 : vector<1x2x128xf32> to vector<2x128xf32>
    %c0_44 = arith.constant 0 : index
    %c0_45 = arith.constant 0 : index
    %134 = vector.load %arg2[%c0_44, %c0_45] : memref<32x128xf32, #tpu.memory_space<vmem>>, vector<32x128xf32>
    %cst_46 = arith.constant dense<0.000000e+00> : vector<2x128xf32>
    %135 = tpu.matmul %102, %134, %cst_46 {dimension_numbers = #tpu.dot_dimension_numbers<[1], [0], [0], [1], [0, 0, 1, 1], [], []>} : vector<2x32xf32>, vector<32x128xf32>, vector<2x128xf32> -> vector<2x128xf32>
    %136 = arith.addf %133, %135 : vector<2x128xf32>
    %137 = vector.extract_strided_slice %136 {offsets = [0, 0], sizes = [2, 32], strides = [1, 1]} : vector<2x128xf32> to vector<2x32xf32>
    %138 = arith.negf %137 : vector<2x32xf32>
    %139 = math.exp %138 : vector<2x32xf32>
    %cst_47 = arith.constant 1.000000e+00 : f32
    %140 = vector.broadcast %cst_47 : f32 to vector<2x32xf32>
    %141 = arith.addf %140, %139 : vector<2x32xf32>
    %142 = arith.divf %140, %141 : vector<2x32xf32>
    %143 = vector.extract_strided_slice %136 {offsets = [0, 32], sizes = [2, 32], strides = [1, 1]} : vector<2x128xf32> to vector<2x32xf32>
    %144 = arith.negf %143 : vector<2x32xf32>
    %145 = math.exp %144 : vector<2x32xf32>
    %cst_48 = arith.constant 1.000000e+00 : f32
    %146 = vector.broadcast %cst_48 : f32 to vector<2x32xf32>
    %147 = arith.addf %146, %145 : vector<2x32xf32>
    %148 = arith.divf %146, %147 : vector<2x32xf32>
    %149 = vector.extract_strided_slice %136 {offsets = [0, 64], sizes = [2, 32], strides = [1, 1]} : vector<2x128xf32> to vector<2x32xf32>
    %150 = math.tanh %149 : vector<2x32xf32>
    %151 = vector.extract_strided_slice %136 {offsets = [0, 96], sizes = [2, 32], strides = [1, 1]} : vector<2x128xf32> to vector<2x32xf32>
    %152 = arith.negf %151 : vector<2x32xf32>
    %153 = math.exp %152 : vector<2x32xf32>
    %cst_49 = arith.constant 1.000000e+00 : f32
    %154 = vector.broadcast %cst_49 : f32 to vector<2x32xf32>
    %155 = arith.addf %154, %153 : vector<2x32xf32>
    %156 = arith.divf %154, %155 : vector<2x32xf32>
    %157 = arith.mulf %148, %100 : vector<2x32xf32>
    %158 = arith.mulf %142, %150 : vector<2x32xf32>
    %159 = arith.addf %157, %158 : vector<2x32xf32>
    %160 = math.tanh %159 : vector<2x32xf32>
    %161 = arith.mulf %156, %160 : vector<2x32xf32>
    %162 = tpu.concatenate %161, %131 in 1 : vector<2x32xf32>, vector<2x32xf32> -> vector<2x64xf32>
    %c0_50 = arith.constant 0 : index
    %c0_51 = arith.constant 0 : index
    %163 = vector.load %arg3[%c0_50, %c0_51] : memref<64x128xf32, #tpu.memory_space<vmem>>, vector<64x128xf32>
    %cst_52 = arith.constant dense<0.000000e+00> : vector<2x128xf32>
    %164 = tpu.matmul %162, %163, %cst_52 {dimension_numbers = #tpu.dot_dimension_numbers<[1], [0], [0], [1], [0, 0, 1, 1], [], []>} : vector<2x64xf32>, vector<64x128xf32>, vector<2x128xf32> -> vector<2x128xf32>
    %165 = arith.addf %164, %13 : vector<2x128xf32>
    %166 = vector.extract_strided_slice %165 {offsets = [0, 0], sizes = [2, 32], strides = [1, 1]} : vector<2x128xf32> to vector<2x32xf32>
    %167 = arith.negf %166 : vector<2x32xf32>
    %168 = math.exp %167 : vector<2x32xf32>
    %cst_53 = arith.constant 1.000000e+00 : f32
    %169 = vector.broadcast %cst_53 : f32 to vector<2x32xf32>
    %170 = arith.addf %169, %168 : vector<2x32xf32>
    %171 = arith.divf %169, %170 : vector<2x32xf32>
    %172 = vector.extract_strided_slice %165 {offsets = [0, 32], sizes = [2, 32], strides = [1, 1]} : vector<2x128xf32> to vector<2x32xf32>
    %173 = arith.negf %172 : vector<2x32xf32>
    %174 = math.exp %173 : vector<2x32xf32>
    %cst_54 = arith.constant 1.000000e+00 : f32
    %175 = vector.broadcast %cst_54 : f32 to vector<2x32xf32>
    %176 = arith.addf %175, %174 : vector<2x32xf32>
    %177 = arith.divf %175, %176 : vector<2x32xf32>
    %178 = vector.extract_strided_slice %165 {offsets = [0, 64], sizes = [2, 32], strides = [1, 1]} : vector<2x128xf32> to vector<2x32xf32>
    %179 = math.tanh %178 : vector<2x32xf32>
    %180 = vector.extract_strided_slice %165 {offsets = [0, 96], sizes = [2, 32], strides = [1, 1]} : vector<2x128xf32> to vector<2x32xf32>
    %181 = arith.negf %180 : vector<2x32xf32>
    %182 = math.exp %181 : vector<2x32xf32>
    %cst_55 = arith.constant 1.000000e+00 : f32
    %183 = vector.broadcast %cst_55 : f32 to vector<2x32xf32>
    %184 = arith.addf %183, %182 : vector<2x32xf32>
    %185 = arith.divf %183, %184 : vector<2x32xf32>
    %186 = arith.mulf %177, %129 : vector<2x32xf32>
    %187 = arith.mulf %171, %179 : vector<2x32xf32>
    %188 = arith.addf %186, %187 : vector<2x32xf32>
    %189 = math.tanh %188 : vector<2x32xf32>
    %190 = arith.mulf %185, %189 : vector<2x32xf32>
    %c3 = arith.constant 3 : index
    %c0_56 = arith.constant 0 : index
    %c0_57 = arith.constant 0 : index
    %191 = vector.load %arg1[%c3, %c0_56, %c0_57] : memref<8x2x128xf32, #tpu.memory_space<vmem>>, vector<1x2x128xf32>
    %192 = vector.shape_cast %191 : vector<1x2x128xf32> to vector<2x128xf32>
    %c0_58 = arith.constant 0 : index
    %c0_59 = arith.constant 0 : index
    %193 = vector.load %arg2[%c0_58, %c0_59] : memref<32x128xf32, #tpu.memory_space<vmem>>, vector<32x128xf32>
    %cst_60 = arith.constant dense<0.000000e+00> : vector<2x128xf32>
    %194 = tpu.matmul %161, %193, %cst_60 {dimension_numbers = #tpu.dot_dimension_numbers<[1], [0], [0], [1], [0, 0, 1, 1], [], []>} : vector<2x32xf32>, vector<32x128xf32>, vector<2x128xf32> -> vector<2x128xf32>
    %195 = arith.addf %192, %194 : vector<2x128xf32>
    %196 = vector.extract_strided_slice %195 {offsets = [0, 0], sizes = [2, 32], strides = [1, 1]} : vector<2x128xf32> to vector<2x32xf32>
    %197 = arith.negf %196 : vector<2x32xf32>
    %198 = math.exp %197 : vector<2x32xf32>
    %cst_61 = arith.constant 1.000000e+00 : f32
    %199 = vector.broadcast %cst_61 : f32 to vector<2x32xf32>
    %200 = arith.addf %199, %198 : vector<2x32xf32>
    %201 = arith.divf %199, %200 : vector<2x32xf32>
    %202 = vector.extract_strided_slice %195 {offsets = [0, 32], sizes = [2, 32], strides = [1, 1]} : vector<2x128xf32> to vector<2x32xf32>
    %203 = arith.negf %202 : vector<2x32xf32>
    %204 = math.exp %203 : vector<2x32xf32>
    %cst_62 = arith.constant 1.000000e+00 : f32
    %205 = vector.broadcast %cst_62 : f32 to vector<2x32xf32>
    %206 = arith.addf %205, %204 : vector<2x32xf32>
    %207 = arith.divf %205, %206 : vector<2x32xf32>
    %208 = vector.extract_strided_slice %195 {offsets = [0, 64], sizes = [2, 32], strides = [1, 1]} : vector<2x128xf32> to vector<2x32xf32>
    %209 = math.tanh %208 : vector<2x32xf32>
    %210 = vector.extract_strided_slice %195 {offsets = [0, 96], sizes = [2, 32], strides = [1, 1]} : vector<2x128xf32> to vector<2x32xf32>
    %211 = arith.negf %210 : vector<2x32xf32>
    %212 = math.exp %211 : vector<2x32xf32>
    %cst_63 = arith.constant 1.000000e+00 : f32
    %213 = vector.broadcast %cst_63 : f32 to vector<2x32xf32>
    %214 = arith.addf %213, %212 : vector<2x32xf32>
    %215 = arith.divf %213, %214 : vector<2x32xf32>
    %216 = arith.mulf %207, %159 : vector<2x32xf32>
    %217 = arith.mulf %201, %209 : vector<2x32xf32>
    %218 = arith.addf %216, %217 : vector<2x32xf32>
    %219 = math.tanh %218 : vector<2x32xf32>
    %220 = arith.mulf %215, %219 : vector<2x32xf32>
    %221 = tpu.concatenate %220, %190 in 1 : vector<2x32xf32>, vector<2x32xf32> -> vector<2x64xf32>
    %c0_64 = arith.constant 0 : index
    %c0_65 = arith.constant 0 : index
    %222 = vector.load %arg3[%c0_64, %c0_65] : memref<64x128xf32, #tpu.memory_space<vmem>>, vector<64x128xf32>
    %cst_66 = arith.constant dense<0.000000e+00> : vector<2x128xf32>
    %223 = tpu.matmul %221, %222, %cst_66 {dimension_numbers = #tpu.dot_dimension_numbers<[1], [0], [0], [1], [0, 0, 1, 1], [], []>} : vector<2x64xf32>, vector<64x128xf32>, vector<2x128xf32> -> vector<2x128xf32>
    %224 = arith.addf %223, %13 : vector<2x128xf32>
    %225 = vector.extract_strided_slice %224 {offsets = [0, 0], sizes = [2, 32], strides = [1, 1]} : vector<2x128xf32> to vector<2x32xf32>
    %226 = arith.negf %225 : vector<2x32xf32>
    %227 = math.exp %226 : vector<2x32xf32>
    %cst_67 = arith.constant 1.000000e+00 : f32
    %228 = vector.broadcast %cst_67 : f32 to vector<2x32xf32>
    %229 = arith.addf %228, %227 : vector<2x32xf32>
    %230 = arith.divf %228, %229 : vector<2x32xf32>
    %231 = vector.extract_strided_slice %224 {offsets = [0, 32], sizes = [2, 32], strides = [1, 1]} : vector<2x128xf32> to vector<2x32xf32>
    %232 = arith.negf %231 : vector<2x32xf32>
    %233 = math.exp %232 : vector<2x32xf32>
    %cst_68 = arith.constant 1.000000e+00 : f32
    %234 = vector.broadcast %cst_68 : f32 to vector<2x32xf32>
    %235 = arith.addf %234, %233 : vector<2x32xf32>
    %236 = arith.divf %234, %235 : vector<2x32xf32>
    %237 = vector.extract_strided_slice %224 {offsets = [0, 64], sizes = [2, 32], strides = [1, 1]} : vector<2x128xf32> to vector<2x32xf32>
    %238 = math.tanh %237 : vector<2x32xf32>
    %239 = vector.extract_strided_slice %224 {offsets = [0, 96], sizes = [2, 32], strides = [1, 1]} : vector<2x128xf32> to vector<2x32xf32>
    %240 = arith.negf %239 : vector<2x32xf32>
    %241 = math.exp %240 : vector<2x32xf32>
    %cst_69 = arith.constant 1.000000e+00 : f32
    %242 = vector.broadcast %cst_69 : f32 to vector<2x32xf32>
    %243 = arith.addf %242, %241 : vector<2x32xf32>
    %244 = arith.divf %242, %243 : vector<2x32xf32>
    %245 = arith.mulf %236, %188 : vector<2x32xf32>
    %246 = arith.mulf %230, %238 : vector<2x32xf32>
    %247 = arith.addf %245, %246 : vector<2x32xf32>
    %248 = math.tanh %247 : vector<2x32xf32>
    %249 = arith.mulf %244, %248 : vector<2x32xf32>
    %c4 = arith.constant 4 : index
    %c0_70 = arith.constant 0 : index
    %c0_71 = arith.constant 0 : index
    %250 = vector.load %arg1[%c4, %c0_70, %c0_71] : memref<8x2x128xf32, #tpu.memory_space<vmem>>, vector<1x2x128xf32>
    %251 = vector.shape_cast %250 : vector<1x2x128xf32> to vector<2x128xf32>
    %c0_72 = arith.constant 0 : index
    %c0_73 = arith.constant 0 : index
    %252 = vector.load %arg2[%c0_72, %c0_73] : memref<32x128xf32, #tpu.memory_space<vmem>>, vector<32x128xf32>
    %cst_74 = arith.constant dense<0.000000e+00> : vector<2x128xf32>
    %253 = tpu.matmul %220, %252, %cst_74 {dimension_numbers = #tpu.dot_dimension_numbers<[1], [0], [0], [1], [0, 0, 1, 1], [], []>} : vector<2x32xf32>, vector<32x128xf32>, vector<2x128xf32> -> vector<2x128xf32>
    %254 = arith.addf %251, %253 : vector<2x128xf32>
    %255 = vector.extract_strided_slice %254 {offsets = [0, 0], sizes = [2, 32], strides = [1, 1]} : vector<2x128xf32> to vector<2x32xf32>
    %256 = arith.negf %255 : vector<2x32xf32>
    %257 = math.exp %256 : vector<2x32xf32>
    %cst_75 = arith.constant 1.000000e+00 : f32
    %258 = vector.broadcast %cst_75 : f32 to vector<2x32xf32>
    %259 = arith.addf %258, %257 : vector<2x32xf32>
    %260 = arith.divf %258, %259 : vector<2x32xf32>
    %261 = vector.extract_strided_slice %254 {offsets = [0, 32], sizes = [2, 32], strides = [1, 1]} : vector<2x128xf32> to vector<2x32xf32>
    %262 = arith.negf %261 : vector<2x32xf32>
    %263 = math.exp %262 : vector<2x32xf32>
    %cst_76 = arith.constant 1.000000e+00 : f32
    %264 = vector.broadcast %cst_76 : f32 to vector<2x32xf32>
    %265 = arith.addf %264, %263 : vector<2x32xf32>
    %266 = arith.divf %264, %265 : vector<2x32xf32>
    %267 = vector.extract_strided_slice %254 {offsets = [0, 64], sizes = [2, 32], strides = [1, 1]} : vector<2x128xf32> to vector<2x32xf32>
    %268 = math.tanh %267 : vector<2x32xf32>
    %269 = vector.extract_strided_slice %254 {offsets = [0, 96], sizes = [2, 32], strides = [1, 1]} : vector<2x128xf32> to vector<2x32xf32>
    %270 = arith.negf %269 : vector<2x32xf32>
    %271 = math.exp %270 : vector<2x32xf32>
    %cst_77 = arith.constant 1.000000e+00 : f32
    %272 = vector.broadcast %cst_77 : f32 to vector<2x32xf32>
    %273 = arith.addf %272, %271 : vector<2x32xf32>
    %274 = arith.divf %272, %273 : vector<2x32xf32>
    %275 = arith.mulf %266, %218 : vector<2x32xf32>
    %276 = arith.mulf %260, %268 : vector<2x32xf32>
    %277 = arith.addf %275, %276 : vector<2x32xf32>
    %278 = math.tanh %277 : vector<2x32xf32>
    %279 = arith.mulf %274, %278 : vector<2x32xf32>
    %280 = tpu.concatenate %279, %249 in 1 : vector<2x32xf32>, vector<2x32xf32> -> vector<2x64xf32>
    %c0_78 = arith.constant 0 : index
    %c0_79 = arith.constant 0 : index
    %281 = vector.load %arg3[%c0_78, %c0_79] : memref<64x128xf32, #tpu.memory_space<vmem>>, vector<64x128xf32>
    %cst_80 = arith.constant dense<0.000000e+00> : vector<2x128xf32>
    %282 = tpu.matmul %280, %281, %cst_80 {dimension_numbers = #tpu.dot_dimension_numbers<[1], [0], [0], [1], [0, 0, 1, 1], [], []>} : vector<2x64xf32>, vector<64x128xf32>, vector<2x128xf32> -> vector<2x128xf32>
    %283 = arith.addf %282, %13 : vector<2x128xf32>
    %284 = vector.extract_strided_slice %283 {offsets = [0, 0], sizes = [2, 32], strides = [1, 1]} : vector<2x128xf32> to vector<2x32xf32>
    %285 = arith.negf %284 : vector<2x32xf32>
    %286 = math.exp %285 : vector<2x32xf32>
    %cst_81 = arith.constant 1.000000e+00 : f32
    %287 = vector.broadcast %cst_81 : f32 to vector<2x32xf32>
    %288 = arith.addf %287, %286 : vector<2x32xf32>
    %289 = arith.divf %287, %288 : vector<2x32xf32>
    %290 = vector.extract_strided_slice %283 {offsets = [0, 32], sizes = [2, 32], strides = [1, 1]} : vector<2x128xf32> to vector<2x32xf32>
    %291 = arith.negf %290 : vector<2x32xf32>
    %292 = math.exp %291 : vector<2x32xf32>
    %cst_82 = arith.constant 1.000000e+00 : f32
    %293 = vector.broadcast %cst_82 : f32 to vector<2x32xf32>
    %294 = arith.addf %293, %292 : vector<2x32xf32>
    %295 = arith.divf %293, %294 : vector<2x32xf32>
    %296 = vector.extract_strided_slice %283 {offsets = [0, 64], sizes = [2, 32], strides = [1, 1]} : vector<2x128xf32> to vector<2x32xf32>
    %297 = math.tanh %296 : vector<2x32xf32>
    %298 = vector.extract_strided_slice %283 {offsets = [0, 96], sizes = [2, 32], strides = [1, 1]} : vector<2x128xf32> to vector<2x32xf32>
    %299 = arith.negf %298 : vector<2x32xf32>
    %300 = math.exp %299 : vector<2x32xf32>
    %cst_83 = arith.constant 1.000000e+00 : f32
    %301 = vector.broadcast %cst_83 : f32 to vector<2x32xf32>
    %302 = arith.addf %301, %300 : vector<2x32xf32>
    %303 = arith.divf %301, %302 : vector<2x32xf32>
    %304 = arith.mulf %295, %247 : vector<2x32xf32>
    %305 = arith.mulf %289, %297 : vector<2x32xf32>
    %306 = arith.addf %304, %305 : vector<2x32xf32>
    %307 = math.tanh %306 : vector<2x32xf32>
    %308 = arith.mulf %303, %307 : vector<2x32xf32>
    %c5 = arith.constant 5 : index
    %c0_84 = arith.constant 0 : index
    %c0_85 = arith.constant 0 : index
    %309 = vector.load %arg1[%c5, %c0_84, %c0_85] : memref<8x2x128xf32, #tpu.memory_space<vmem>>, vector<1x2x128xf32>
    %310 = vector.shape_cast %309 : vector<1x2x128xf32> to vector<2x128xf32>
    %c0_86 = arith.constant 0 : index
    %c0_87 = arith.constant 0 : index
    %311 = vector.load %arg2[%c0_86, %c0_87] : memref<32x128xf32, #tpu.memory_space<vmem>>, vector<32x128xf32>
    %cst_88 = arith.constant dense<0.000000e+00> : vector<2x128xf32>
    %312 = tpu.matmul %279, %311, %cst_88 {dimension_numbers = #tpu.dot_dimension_numbers<[1], [0], [0], [1], [0, 0, 1, 1], [], []>} : vector<2x32xf32>, vector<32x128xf32>, vector<2x128xf32> -> vector<2x128xf32>
    %313 = arith.addf %310, %312 : vector<2x128xf32>
    %314 = vector.extract_strided_slice %313 {offsets = [0, 0], sizes = [2, 32], strides = [1, 1]} : vector<2x128xf32> to vector<2x32xf32>
    %315 = arith.negf %314 : vector<2x32xf32>
    %316 = math.exp %315 : vector<2x32xf32>
    %cst_89 = arith.constant 1.000000e+00 : f32
    %317 = vector.broadcast %cst_89 : f32 to vector<2x32xf32>
    %318 = arith.addf %317, %316 : vector<2x32xf32>
    %319 = arith.divf %317, %318 : vector<2x32xf32>
    %320 = vector.extract_strided_slice %313 {offsets = [0, 32], sizes = [2, 32], strides = [1, 1]} : vector<2x128xf32> to vector<2x32xf32>
    %321 = arith.negf %320 : vector<2x32xf32>
    %322 = math.exp %321 : vector<2x32xf32>
    %cst_90 = arith.constant 1.000000e+00 : f32
    %323 = vector.broadcast %cst_90 : f32 to vector<2x32xf32>
    %324 = arith.addf %323, %322 : vector<2x32xf32>
    %325 = arith.divf %323, %324 : vector<2x32xf32>
    %326 = vector.extract_strided_slice %313 {offsets = [0, 64], sizes = [2, 32], strides = [1, 1]} : vector<2x128xf32> to vector<2x32xf32>
    %327 = math.tanh %326 : vector<2x32xf32>
    %328 = vector.extract_strided_slice %313 {offsets = [0, 96], sizes = [2, 32], strides = [1, 1]} : vector<2x128xf32> to vector<2x32xf32>
    %329 = arith.negf %328 : vector<2x32xf32>
    %330 = math.exp %329 : vector<2x32xf32>
    %cst_91 = arith.constant 1.000000e+00 : f32
    %331 = vector.broadcast %cst_91 : f32 to vector<2x32xf32>
    %332 = arith.addf %331, %330 : vector<2x32xf32>
    %333 = arith.divf %331, %332 : vector<2x32xf32>
    %334 = arith.mulf %325, %277 : vector<2x32xf32>
    %335 = arith.mulf %319, %327 : vector<2x32xf32>
    %336 = arith.addf %334, %335 : vector<2x32xf32>
    %337 = math.tanh %336 : vector<2x32xf32>
    %338 = arith.mulf %333, %337 : vector<2x32xf32>
    %339 = tpu.concatenate %338, %308 in 1 : vector<2x32xf32>, vector<2x32xf32> -> vector<2x64xf32>
    %c0_92 = arith.constant 0 : index
    %c0_93 = arith.constant 0 : index
    %340 = vector.load %arg3[%c0_92, %c0_93] : memref<64x128xf32, #tpu.memory_space<vmem>>, vector<64x128xf32>
    %cst_94 = arith.constant dense<0.000000e+00> : vector<2x128xf32>
    %341 = tpu.matmul %339, %340, %cst_94 {dimension_numbers = #tpu.dot_dimension_numbers<[1], [0], [0], [1], [0, 0, 1, 1], [], []>} : vector<2x64xf32>, vector<64x128xf32>, vector<2x128xf32> -> vector<2x128xf32>
    %342 = arith.addf %341, %13 : vector<2x128xf32>
    %343 = vector.extract_strided_slice %342 {offsets = [0, 0], sizes = [2, 32], strides = [1, 1]} : vector<2x128xf32> to vector<2x32xf32>
    %344 = arith.negf %343 : vector<2x32xf32>
    %345 = math.exp %344 : vector<2x32xf32>
    %cst_95 = arith.constant 1.000000e+00 : f32
    %346 = vector.broadcast %cst_95 : f32 to vector<2x32xf32>
    %347 = arith.addf %346, %345 : vector<2x32xf32>
    %348 = arith.divf %346, %347 : vector<2x32xf32>
    %349 = vector.extract_strided_slice %342 {offsets = [0, 32], sizes = [2, 32], strides = [1, 1]} : vector<2x128xf32> to vector<2x32xf32>
    %350 = arith.negf %349 : vector<2x32xf32>
    %351 = math.exp %350 : vector<2x32xf32>
    %cst_96 = arith.constant 1.000000e+00 : f32
    %352 = vector.broadcast %cst_96 : f32 to vector<2x32xf32>
    %353 = arith.addf %352, %351 : vector<2x32xf32>
    %354 = arith.divf %352, %353 : vector<2x32xf32>
    %355 = vector.extract_strided_slice %342 {offsets = [0, 64], sizes = [2, 32], strides = [1, 1]} : vector<2x128xf32> to vector<2x32xf32>
    %356 = math.tanh %355 : vector<2x32xf32>
    %357 = vector.extract_strided_slice %342 {offsets = [0, 96], sizes = [2, 32], strides = [1, 1]} : vector<2x128xf32> to vector<2x32xf32>
    %358 = arith.negf %357 : vector<2x32xf32>
    %359 = math.exp %358 : vector<2x32xf32>
    %cst_97 = arith.constant 1.000000e+00 : f32
    %360 = vector.broadcast %cst_97 : f32 to vector<2x32xf32>
    %361 = arith.addf %360, %359 : vector<2x32xf32>
    %362 = arith.divf %360, %361 : vector<2x32xf32>
    %363 = arith.mulf %354, %306 : vector<2x32xf32>
    %364 = arith.mulf %348, %356 : vector<2x32xf32>
    %365 = arith.addf %363, %364 : vector<2x32xf32>
    %366 = math.tanh %365 : vector<2x32xf32>
    %367 = arith.mulf %362, %366 : vector<2x32xf32>
    %c6 = arith.constant 6 : index
    %c0_98 = arith.constant 0 : index
    %c0_99 = arith.constant 0 : index
    %368 = vector.load %arg1[%c6, %c0_98, %c0_99] : memref<8x2x128xf32, #tpu.memory_space<vmem>>, vector<1x2x128xf32>
    %369 = vector.shape_cast %368 : vector<1x2x128xf32> to vector<2x128xf32>
    %c0_100 = arith.constant 0 : index
    %c0_101 = arith.constant 0 : index
    %370 = vector.load %arg2[%c0_100, %c0_101] : memref<32x128xf32, #tpu.memory_space<vmem>>, vector<32x128xf32>
    %cst_102 = arith.constant dense<0.000000e+00> : vector<2x128xf32>
    %371 = tpu.matmul %338, %370, %cst_102 {dimension_numbers = #tpu.dot_dimension_numbers<[1], [0], [0], [1], [0, 0, 1, 1], [], []>} : vector<2x32xf32>, vector<32x128xf32>, vector<2x128xf32> -> vector<2x128xf32>
    %372 = arith.addf %369, %371 : vector<2x128xf32>
    %373 = vector.extract_strided_slice %372 {offsets = [0, 0], sizes = [2, 32], strides = [1, 1]} : vector<2x128xf32> to vector<2x32xf32>
    %374 = arith.negf %373 : vector<2x32xf32>
    %375 = math.exp %374 : vector<2x32xf32>
    %cst_103 = arith.constant 1.000000e+00 : f32
    %376 = vector.broadcast %cst_103 : f32 to vector<2x32xf32>
    %377 = arith.addf %376, %375 : vector<2x32xf32>
    %378 = arith.divf %376, %377 : vector<2x32xf32>
    %379 = vector.extract_strided_slice %372 {offsets = [0, 32], sizes = [2, 32], strides = [1, 1]} : vector<2x128xf32> to vector<2x32xf32>
    %380 = arith.negf %379 : vector<2x32xf32>
    %381 = math.exp %380 : vector<2x32xf32>
    %cst_104 = arith.constant 1.000000e+00 : f32
    %382 = vector.broadcast %cst_104 : f32 to vector<2x32xf32>
    %383 = arith.addf %382, %381 : vector<2x32xf32>
    %384 = arith.divf %382, %383 : vector<2x32xf32>
    %385 = vector.extract_strided_slice %372 {offsets = [0, 64], sizes = [2, 32], strides = [1, 1]} : vector<2x128xf32> to vector<2x32xf32>
    %386 = math.tanh %385 : vector<2x32xf32>
    %387 = vector.extract_strided_slice %372 {offsets = [0, 96], sizes = [2, 32], strides = [1, 1]} : vector<2x128xf32> to vector<2x32xf32>
    %388 = arith.negf %387 : vector<2x32xf32>
    %389 = math.exp %388 : vector<2x32xf32>
    %cst_105 = arith.constant 1.000000e+00 : f32
    %390 = vector.broadcast %cst_105 : f32 to vector<2x32xf32>
    %391 = arith.addf %390, %389 : vector<2x32xf32>
    %392 = arith.divf %390, %391 : vector<2x32xf32>
    %393 = arith.mulf %384, %336 : vector<2x32xf32>
    %394 = arith.mulf %378, %386 : vector<2x32xf32>
    %395 = arith.addf %393, %394 : vector<2x32xf32>
    %396 = math.tanh %395 : vector<2x32xf32>
    %397 = arith.mulf %392, %396 : vector<2x32xf32>
    %398 = tpu.concatenate %397, %367 in 1 : vector<2x32xf32>, vector<2x32xf32> -> vector<2x64xf32>
    %c0_106 = arith.constant 0 : index
    %c0_107 = arith.constant 0 : index
    %399 = vector.load %arg3[%c0_106, %c0_107] : memref<64x128xf32, #tpu.memory_space<vmem>>, vector<64x128xf32>
    %cst_108 = arith.constant dense<0.000000e+00> : vector<2x128xf32>
    %400 = tpu.matmul %398, %399, %cst_108 {dimension_numbers = #tpu.dot_dimension_numbers<[1], [0], [0], [1], [0, 0, 1, 1], [], []>} : vector<2x64xf32>, vector<64x128xf32>, vector<2x128xf32> -> vector<2x128xf32>
    %401 = arith.addf %400, %13 : vector<2x128xf32>
    %402 = vector.extract_strided_slice %401 {offsets = [0, 0], sizes = [2, 32], strides = [1, 1]} : vector<2x128xf32> to vector<2x32xf32>
    %403 = arith.negf %402 : vector<2x32xf32>
    %404 = math.exp %403 : vector<2x32xf32>
    %cst_109 = arith.constant 1.000000e+00 : f32
    %405 = vector.broadcast %cst_109 : f32 to vector<2x32xf32>
    %406 = arith.addf %405, %404 : vector<2x32xf32>
    %407 = arith.divf %405, %406 : vector<2x32xf32>
    %408 = vector.extract_strided_slice %401 {offsets = [0, 32], sizes = [2, 32], strides = [1, 1]} : vector<2x128xf32> to vector<2x32xf32>
    %409 = arith.negf %408 : vector<2x32xf32>
    %410 = math.exp %409 : vector<2x32xf32>
    %cst_110 = arith.constant 1.000000e+00 : f32
    %411 = vector.broadcast %cst_110 : f32 to vector<2x32xf32>
    %412 = arith.addf %411, %410 : vector<2x32xf32>
    %413 = arith.divf %411, %412 : vector<2x32xf32>
    %414 = vector.extract_strided_slice %401 {offsets = [0, 64], sizes = [2, 32], strides = [1, 1]} : vector<2x128xf32> to vector<2x32xf32>
    %415 = math.tanh %414 : vector<2x32xf32>
    %416 = vector.extract_strided_slice %401 {offsets = [0, 96], sizes = [2, 32], strides = [1, 1]} : vector<2x128xf32> to vector<2x32xf32>
    %417 = arith.negf %416 : vector<2x32xf32>
    %418 = math.exp %417 : vector<2x32xf32>
    %cst_111 = arith.constant 1.000000e+00 : f32
    %419 = vector.broadcast %cst_111 : f32 to vector<2x32xf32>
    %420 = arith.addf %419, %418 : vector<2x32xf32>
    %421 = arith.divf %419, %420 : vector<2x32xf32>
    %422 = arith.mulf %413, %365 : vector<2x32xf32>
    %423 = arith.mulf %407, %415 : vector<2x32xf32>
    %424 = arith.addf %422, %423 : vector<2x32xf32>
    %425 = math.tanh %424 : vector<2x32xf32>
    %426 = arith.mulf %421, %425 : vector<2x32xf32>
    %c7 = arith.constant 7 : index
    %c0_112 = arith.constant 0 : index
    %c0_113 = arith.constant 0 : index
    %427 = vector.load %arg1[%c7, %c0_112, %c0_113] : memref<8x2x128xf32, #tpu.memory_space<vmem>>, vector<1x2x128xf32>
    %428 = vector.shape_cast %427 : vector<1x2x128xf32> to vector<2x128xf32>
    %c0_114 = arith.constant 0 : index
    %c0_115 = arith.constant 0 : index
    %429 = vector.load %arg2[%c0_114, %c0_115] : memref<32x128xf32, #tpu.memory_space<vmem>>, vector<32x128xf32>
    %cst_116 = arith.constant dense<0.000000e+00> : vector<2x128xf32>
    %430 = tpu.matmul %397, %429, %cst_116 {dimension_numbers = #tpu.dot_dimension_numbers<[1], [0], [0], [1], [0, 0, 1, 1], [], []>} : vector<2x32xf32>, vector<32x128xf32>, vector<2x128xf32> -> vector<2x128xf32>
    %431 = arith.addf %428, %430 : vector<2x128xf32>
    %432 = vector.extract_strided_slice %431 {offsets = [0, 0], sizes = [2, 32], strides = [1, 1]} : vector<2x128xf32> to vector<2x32xf32>
    %433 = arith.negf %432 : vector<2x32xf32>
    %434 = math.exp %433 : vector<2x32xf32>
    %cst_117 = arith.constant 1.000000e+00 : f32
    %435 = vector.broadcast %cst_117 : f32 to vector<2x32xf32>
    %436 = arith.addf %435, %434 : vector<2x32xf32>
    %437 = arith.divf %435, %436 : vector<2x32xf32>
    %438 = vector.extract_strided_slice %431 {offsets = [0, 32], sizes = [2, 32], strides = [1, 1]} : vector<2x128xf32> to vector<2x32xf32>
    %439 = arith.negf %438 : vector<2x32xf32>
    %440 = math.exp %439 : vector<2x32xf32>
    %cst_118 = arith.constant 1.000000e+00 : f32
    %441 = vector.broadcast %cst_118 : f32 to vector<2x32xf32>
    %442 = arith.addf %441, %440 : vector<2x32xf32>
    %443 = arith.divf %441, %442 : vector<2x32xf32>
    %444 = vector.extract_strided_slice %431 {offsets = [0, 64], sizes = [2, 32], strides = [1, 1]} : vector<2x128xf32> to vector<2x32xf32>
    %445 = math.tanh %444 : vector<2x32xf32>
    %446 = vector.extract_strided_slice %431 {offsets = [0, 96], sizes = [2, 32], strides = [1, 1]} : vector<2x128xf32> to vector<2x32xf32>
    %447 = arith.negf %446 : vector<2x32xf32>
    %448 = math.exp %447 : vector<2x32xf32>
    %cst_119 = arith.constant 1.000000e+00 : f32
    %449 = vector.broadcast %cst_119 : f32 to vector<2x32xf32>
    %450 = arith.addf %449, %448 : vector<2x32xf32>
    %451 = arith.divf %449, %450 : vector<2x32xf32>
    %452 = arith.mulf %443, %395 : vector<2x32xf32>
    %453 = arith.mulf %437, %445 : vector<2x32xf32>
    %454 = arith.addf %452, %453 : vector<2x32xf32>
    %455 = math.tanh %454 : vector<2x32xf32>
    %456 = arith.mulf %451, %455 : vector<2x32xf32>
    %457 = tpu.concatenate %456, %426 in 1 : vector<2x32xf32>, vector<2x32xf32> -> vector<2x64xf32>
    %c0_120 = arith.constant 0 : index
    %c0_121 = arith.constant 0 : index
    %458 = vector.load %arg3[%c0_120, %c0_121] : memref<64x128xf32, #tpu.memory_space<vmem>>, vector<64x128xf32>
    %cst_122 = arith.constant dense<0.000000e+00> : vector<2x128xf32>
    %459 = tpu.matmul %457, %458, %cst_122 {dimension_numbers = #tpu.dot_dimension_numbers<[1], [0], [0], [1], [0, 0, 1, 1], [], []>} : vector<2x64xf32>, vector<64x128xf32>, vector<2x128xf32> -> vector<2x128xf32>
    %460 = arith.addf %459, %13 : vector<2x128xf32>
    %461 = vector.extract_strided_slice %460 {offsets = [0, 0], sizes = [2, 32], strides = [1, 1]} : vector<2x128xf32> to vector<2x32xf32>
    %462 = arith.negf %461 : vector<2x32xf32>
    %463 = math.exp %462 : vector<2x32xf32>
    %cst_123 = arith.constant 1.000000e+00 : f32
    %464 = vector.broadcast %cst_123 : f32 to vector<2x32xf32>
    %465 = arith.addf %464, %463 : vector<2x32xf32>
    %466 = arith.divf %464, %465 : vector<2x32xf32>
    %467 = vector.extract_strided_slice %460 {offsets = [0, 32], sizes = [2, 32], strides = [1, 1]} : vector<2x128xf32> to vector<2x32xf32>
    %468 = arith.negf %467 : vector<2x32xf32>
    %469 = math.exp %468 : vector<2x32xf32>
    %cst_124 = arith.constant 1.000000e+00 : f32
    %470 = vector.broadcast %cst_124 : f32 to vector<2x32xf32>
    %471 = arith.addf %470, %469 : vector<2x32xf32>
    %472 = arith.divf %470, %471 : vector<2x32xf32>
    %473 = vector.extract_strided_slice %460 {offsets = [0, 64], sizes = [2, 32], strides = [1, 1]} : vector<2x128xf32> to vector<2x32xf32>
    %474 = math.tanh %473 : vector<2x32xf32>
    %475 = vector.extract_strided_slice %460 {offsets = [0, 96], sizes = [2, 32], strides = [1, 1]} : vector<2x128xf32> to vector<2x32xf32>
    %476 = arith.negf %475 : vector<2x32xf32>
    %477 = math.exp %476 : vector<2x32xf32>
    %cst_125 = arith.constant 1.000000e+00 : f32
    %478 = vector.broadcast %cst_125 : f32 to vector<2x32xf32>
    %479 = arith.addf %478, %477 : vector<2x32xf32>
    %480 = arith.divf %478, %479 : vector<2x32xf32>
    %481 = arith.mulf %472, %424 : vector<2x32xf32>
    %482 = arith.mulf %466, %474 : vector<2x32xf32>
    %483 = arith.addf %481, %482 : vector<2x32xf32>
    %484 = math.tanh %483 : vector<2x32xf32>
    %485 = arith.mulf %480, %484 : vector<2x32xf32>
    %c0_126 = arith.constant 0 : index
    %c0_127 = arith.constant 0 : index
    %c0_128 = arith.constant 0 : index
    %486 = vector.load %arg10[%c0_126, %c0_127, %c0_128] : memref<2x2x32xf32, #tpu.memory_space<vmem>>, vector<1x2x32xf32>
    %487 = vector.shape_cast %486 : vector<1x2x32xf32> to vector<2x32xf32>
    %488 = vector.shape_cast %456 : vector<2x32xf32> to vector<1x2x32xf32>
    tpu.vector_store %arg10[%c0_126, %c0_127, %c0_128], %488 {strides = array<i32>} : memref<2x2x32xf32, #tpu.memory_space<vmem>>, vector<1x2x32xf32>,
    %c0_129 = arith.constant 0 : index
    %c0_130 = arith.constant 0 : index
    %c0_131 = arith.constant 0 : index
    %489 = vector.load %arg11[%c0_129, %c0_130, %c0_131] : memref<2x2x32xf32, #tpu.memory_space<vmem>>, vector<1x2x32xf32>
    %490 = vector.shape_cast %489 : vector<1x2x32xf32> to vector<2x32xf32>
    %491 = vector.shape_cast %454 : vector<2x32xf32> to vector<1x2x32xf32>
    tpu.vector_store %arg11[%c0_129, %c0_130, %c0_131], %491 {strides = array<i32>} : memref<2x2x32xf32, #tpu.memory_space<vmem>>, vector<1x2x32xf32>,
    %c1_132 = arith.constant 1 : index
    %c0_133 = arith.constant 0 : index
    %c0_134 = arith.constant 0 : index
    %492 = vector.load %arg10[%c1_132, %c0_133, %c0_134] : memref<2x2x32xf32, #tpu.memory_space<vmem>>, vector<1x2x32xf32>
    %493 = vector.shape_cast %492 : vector<1x2x32xf32> to vector<2x32xf32>
    %494 = vector.shape_cast %485 : vector<2x32xf32> to vector<1x2x32xf32>
    tpu.vector_store %arg10[%c1_132, %c0_133, %c0_134], %494 {strides = array<i32>} : memref<2x2x32xf32, #tpu.memory_space<vmem>>, vector<1x2x32xf32>,
    %c1_135 = arith.constant 1 : index
    %c0_136 = arith.constant 0 : index
    %c0_137 = arith.constant 0 : index
    %495 = vector.load %arg11[%c1_135, %c0_136, %c0_137] : memref<2x2x32xf32, #tpu.memory_space<vmem>>, vector<1x2x32xf32>
    %496 = vector.shape_cast %495 : vector<1x2x32xf32> to vector<2x32xf32>
    %497 = vector.shape_cast %483 : vector<2x32xf32> to vector<1x2x32xf32>
    tpu.vector_store %arg11[%c1_135, %c0_136, %c0_137], %497 {strides = array<i32>} : memref<2x2x32xf32, #tpu.memory_space<vmem>>, vector<1x2x32xf32>,
    %c0_i32_138 = arith.constant 0 : i32
    %498 = arith.cmpi eq, %arg0, %c0_i32_138 : i32
    %499 = arith.extui %498 : i1 to i32
    %c0_i32_139 = arith.constant 0 : i32
    %500 = arith.cmpi ne, %499, %c0_i32_139 : i32
    scf.if %500 {
      %c0_140 = arith.constant 0 : index
      %c0_141 = arith.constant 0 : index
      %501 = vector.load %arg5[%c0_140, %c0_141] : memref<32x4xf32, #tpu.memory_space<vmem>>, vector<32x4xf32>
      %cst_142 = arith.constant dense<0.000000e+00> : vector<2x4xf32>
      %502 = tpu.matmul %485, %501, %cst_142 {dimension_numbers = #tpu.dot_dimension_numbers<[1], [0], [0], [1], [0, 0, 1, 1], [], []>} : vector<2x32xf32>, vector<32x4xf32>, vector<2x4xf32> -> vector<2x4xf32>
      %c0_143 = arith.constant 0 : index
      %c0_144 = arith.constant 0 : index
      %503 = vector.load %arg6[%c0_143, %c0_144] : memref<1x4xf32, #tpu.memory_space<vmem>>, vector<1x4xf32>
      %504 = vector.broadcast %503 : vector<1x4xf32> to vector<2x4xf32>
      %505 = arith.addf %502, %504 : vector<2x4xf32>
      %c0_145 = arith.constant 0 : index
      %c0_146 = arith.constant 0 : index
      %506 = vector.load %arg7[%c0_145, %c0_146] : memref<2x4xf32, #tpu.memory_space<vmem>>, vector<2x4xf32>
      tpu.vector_store %arg7[%c0_145, %c0_146], %505 {strides = array<i32>} : memref<2x4xf32, #tpu.memory_space<vmem>>, vector<2x4xf32>,
      %c0_147 = arith.constant 0 : index
      %c0_148 = arith.constant 0 : index
      %c0_149 = arith.constant 0 : index
      %507 = vector.load %arg10[%c0_147, %c0_148, %c0_149] : memref<2x2x32xf32, #tpu.memory_space<vmem>>, vector<2x2x32xf32>
      %c0_150 = arith.constant 0 : index
      %c0_151 = arith.constant 0 : index
      %c0_152 = arith.constant 0 : index
      %508 = vector.load %arg8[%c0_150, %c0_151, %c0_152] : memref<2x2x32xf32, #tpu.memory_space<vmem>>, vector<2x2x32xf32>
      tpu.vector_store %arg8[%c0_150, %c0_151, %c0_152], %507 {strides = array<i32>} : memref<2x2x32xf32, #tpu.memory_space<vmem>>, vector<2x2x32xf32>,
      %c0_153 = arith.constant 0 : index
      %c0_154 = arith.constant 0 : index
      %c0_155 = arith.constant 0 : index
      %509 = vector.load %arg11[%c0_153, %c0_154, %c0_155] : memref<2x2x32xf32, #tpu.memory_space<vmem>>, vector<2x2x32xf32>
      %c0_156 = arith.constant 0 : index
      %c0_157 = arith.constant 0 : index
      %c0_158 = arith.constant 0 : index
      %510 = vector.load %arg9[%c0_156, %c0_157, %c0_158] : memref<2x2x32xf32, #tpu.memory_space<vmem>>, vector<2x2x32xf32>
      tpu.vector_store %arg9[%c0_156, %c0_157, %c0_158], %509 {strides = array<i32>} : memref<2x2x32xf32, #tpu.memory_space<vmem>>, vector<2x2x32xf32>,
    } else {
    }
    return
  }
  func.func @transform_0(%arg0: i32) -> (i32, i32, i32) {
    %c0_i32 = arith.constant 0 : i32
    %c0_i32_0 = arith.constant 0 : i32
    %c0_i32_1 = arith.constant 0 : i32
    return %arg0, %c0_i32, %c0_i32_0 : i32, i32, i32
  }
  func.func @transform_1(%arg0: i32) -> (i32, i32) {
    %c0_i32 = arith.constant 0 : i32
    %c0_i32_0 = arith.constant 0 : i32
    %c0_i32_1 = arith.constant 0 : i32
    return %c0_i32, %c0_i32_0 : i32, i32
  }
  func.func @transform_2(%arg0: i32) -> (i32, i32) {
    %c0_i32 = arith.constant 0 : i32
    %c0_i32_0 = arith.constant 0 : i32
    %c0_i32_1 = arith.constant 0 : i32
    return %c0_i32, %c0_i32_0 : i32, i32
  }
  func.func @transform_3(%arg0: i32) -> (i32, i32) {
    %c0_i32 = arith.constant 0 : i32
    %c0_i32_0 = arith.constant 0 : i32
    %c0_i32_1 = arith.constant 0 : i32
    return %c0_i32, %c0_i32_0 : i32, i32
  }
  func.func @transform_4(%arg0: i32) -> (i32, i32) {
    %c0_i32 = arith.constant 0 : i32
    %c0_i32_0 = arith.constant 0 : i32
    %c0_i32_1 = arith.constant 0 : i32
    return %c0_i32, %c0_i32_0 : i32, i32
  }
  func.func @transform_5(%arg0: i32) -> (i32, i32) {
    %c0_i32 = arith.constant 0 : i32
    %c0_i32_0 = arith.constant 0 : i32
    %c0_i32_1 = arith.constant 0 : i32
    return %c0_i32, %c0_i32_0 : i32, i32
  }
  func.func @transform_6(%arg0: i32) -> (i32, i32) {
    %c0_i32 = arith.constant 0 : i32
    %c0_i32_0 = arith.constant 0 : i32
    %c0_i32_1 = arith.constant 0 : i32
    return %c0_i32, %c0_i32_0 : i32, i32
  }
  func.func @transform_7(%arg0: i32) -> (i32, i32, i32) {
    %c0_i32 = arith.constant 0 : i32
    %c0_i32_0 = arith.constant 0 : i32
    %c0_i32_1 = arith.constant 0 : i32
    %c0_i32_2 = arith.constant 0 : i32
    return %c0_i32, %c0_i32_0, %c0_i32_1 : i32, i32, i32
  }
  func.func @transform_8(%arg0: i32) -> (i32, i32, i32) {
    %c0_i32 = arith.constant 0 : i32
    %c0_i32_0 = arith.constant 0 : i32
    %c0_i32_1 = arith.constant 0 : i32
    %c0_i32_2 = arith.constant 0 : i32
    return %c0_i32, %c0_i32_0, %c0_i32_1 : i32, i32, i32
  }
}

</mosaic_0001>

<bundles_post_ra>
// kernel: lstm_model_forward.1
= control target key start
LH: loop header
LB: loop body
LE: loop exit
PB: predicated region body
PF: predicated region fallthrough
CT: control target
= control target key end

     0   :  { %14 = vsyncpa [#allocation5], 0  ;;  %vm32_vm0 = vcmask 254976   ;;  %v1483_v3 = vmov 0.0   ;;  %s1915_s0 = inlined_call_operand.vmem [shape: f32[8,2,128], index: 0, kind: input, shape index: {}]   ;;  %s1916_s1 = inlined_call_operand.vmem [shape: f32[32,128], index: 1, kind: input, shape index: {}]   ;;  %s1917_s2 = inlined_call_operand.vmem [shape: f32[64,128], index: 2, kind: input, shape index: {}]   ;;  %s1918_s3 = inlined_call_operand.vmem [shape: f32[1,128], index: 3, kind: input, shape index: {}]   ;;  %s1919_s4 = inlined_call_operand.vmem [shape: f32[32,4], index: 4, kind: input, shape index: {}]   ;;  %s1920_s5 = inlined_call_operand.vmem [shape: f32[1,4], index: 5, kind: input, shape index: {}]   ;;  %s1921_s6 = inlined_call_operand.hbm [shape: f32[2,4], index: 6, kind: output, shape index: {0}]   ;;  %s1922_s7 = inlined_call_operand.hbm [shape: f32[2,2,32], index: 7, kind: output, shape index: {1}]   ;;  %s1923_s8 = inlined_call_operand.hbm [shape: f32[2,2,32], index: 8, kind: output, shape index: {2}]  }
   0x1   :  { %v1539_v0 = vld [vmem:[%s1916_s1 + $0x18] sm:$0xff]  ;;  %v1544_v1 = vld [vmem:[%s1916_s1 + $0x10] sm:$0xff]  ;;  %v1550_v2 = vld [vmem:[%s1916_s1 + $0x8] sm:$0xff]  ;;  %33 = vst.msk [vmem:[#allocation2] sm:$0x3] %vm32_vm0, %v1483_v3 }
   0x2   :  { %68 = vmatpush.msra.mxu0 %v1539_v0  ;;  %216 = vmatpush.msra.mxu2 %v1539_v0  ;;  %34 = vst.msk [vmem:[#allocation2 + $0x2] sm:$0x3] %vm32_vm0, %v1483_v3 }
   0x3   :  { %35 = vst.msk [vmem:[#allocation3] sm:$0x3] %vm32_vm0, %v1483_v3 }
   0x4   :  { %69 = vmatpush.msra.mxu0 %v1544_v1  ;;  %217 = vmatpush.msra.mxu2 %v1544_v1 }
   0x5   :  { %15 = vsyncpa [#allocation7], 0  ;;  %v1561_v4 = vld [vmem:[%s1916_s1] sm:$0xff]  ;;  %36 = vst.msk [vmem:[#allocation3 + $0x2] sm:$0x3] %vm32_vm0, %v1483_v3  ;;  %vm52_vm1 = vcmask 261120  }
   0x6   :  { %70 = vmatpush.msra.mxu0 %v1550_v2  ;;  %218 = vmatpush.msra.mxu2 %v1550_v2  ;;  %v47_v6 = vld [vmem:[%s1915_s0] sm:$0x3]  ;;  %s1484_s14 = smov 64   ;;  %s1485_s15 = smov 32   ;;  %v1590_v31 = vld [vmem:[%s1917_s2 + $0x38] sm:$0xff]  ;;  %v1595_v32 = vld [vmem:[%s1917_s2 + $0x30] sm:$0xff] }
   0x7   :  { %147 = vmatpush.msra.mxu1 %v1590_v31  ;;  %282 = vmatpush.msra.mxu3 %v1590_v31  ;;  %v1602_v33 = vld [vmem:[%s1917_s2 + $0x28] sm:$0xff]  ;;  %v1616_v37 = vld [vmem:[%s1917_s2 + $0x20] sm:$0xff]  ;;  %v1622_v38 = vld [vmem:[%s1917_s2 + $0x18] sm:$0xff]  ;;  %vm135_vm6 = vcmask 523264   ;;  %s1487_s11 = smov [#allocation6]   ;;  %s1194_s13 = sshll.u32 %s1922_s7, 4  ;;  %s1195_s13 = int_to_ptr.hbm [resolvable:$true] %s1194_s13 }
   0x8   :  { %71 = vmatpush.msra.mxu0 %v1561_v4  ;;  %219 = vmatpush.msra.mxu2 %v1561_v4  ;;  %v37_v5 = vld [vmem:[#allocation2] sm:$0x3]  ;;  %v1628_v39 = vld [vmem:[%s1917_s2 + $0x10] sm:$0xff]  ;;  %v1636_v40 = vld [vmem:[%s1917_s2 + $0x8] sm:$0xff]  ;;  %s1192_s12 = sshll.u32 %s1487_s11, 4  ;;  %s1488_s16 = smov 2   ;;  %s1193_s12 = int_to_ptr.vmem [resolvable:$true] %s1192_s12 }
   0x9   :  { %1228 = vmatmul.msk.f32.vlgmr.msra.gmra.mxu0 %vm52_vm1, %v37_v5  ;;  %148 = vmatpush.msra.mxu1 %v1595_v32  ;;  %v39_v36 = vld [vmem:[#allocation2 + $0x2] sm:$0x3]  ;;  %v1683_v48 = vld [vmem:[%s1918_s3] ss:$0 sm:$0xff]  ;;  %s1207_s19 = sshll.u32 %s1923_s8, 4  ;;  %s1489_s20 = smov [#allocation8]   ;;  %s1208_s19 = int_to_ptr.hbm [resolvable:$true] %s1207_s19 }
   0xa   :  { %347 = vmatpush.msrb.mxu0 %v1539_v0  ;;  %v40_v10 = vld [vmem:[#allocation3] sm:$0x3]  ;;  %413 = vmatpush.msrb.mxu2 %v1590_v31  ;;  %v1232_v46 = vld [vmem:[%s1915_s0 + $0x2] sm:$0x3]  ;;  %s1205_s21 = sshll.u32 %s1489_s20, 4  ;;  %s1490_s23 = smov [#allocation4]   ;;  %s1206_s21 = int_to_ptr.vmem [resolvable:$true] %s1205_s21 }
   0xb   :  { %283 = vmatpush.msra.mxu3 %v1595_v32  ;;  %149 = vmatpush.msra.mxu1 %v1602_v33  ;;  %v1647_v41 = vld [vmem:[%s1917_s2] sm:$0xff]  ;;  %s1182_s24 = sshll.u32 %s1490_s23, 4  ;;  %s1184_s26 = sshll.u32 %s1921_s6, 4  ;;  %s1183_s24 = int_to_ptr.vmem [resolvable:$true] %s1182_s24  ;;  %s1185_s26 = int_to_ptr.hbm [resolvable:$true] %s1184_s26 }
   0xc   :  { %348 = vmatpush.msrb.mxu0 %v1544_v1  ;;  %414 = vmatpush.msrb.mxu2 %v1595_v32  ;;  %v42_v42 = vld [vmem:[#allocation3 + $0x2] sm:$0x3] }
   0xd   :  { %284 = vmatpush.msra.mxu3 %v1602_v33  ;;  %150 = vmatpush.msra.mxu1 %v1616_v37 }
   0xe   :  { %349 = vmatpush.msrb.mxu0 %v1550_v2  ;;  %415 = vmatpush.msrb.mxu2 %v1602_v33 }
   0xf   :  { %285 = vmatpush.msra.mxu3 %v1616_v37  ;;  %151 = vmatpush.msra.mxu1 %v1622_v38 }
  0x10   :  { %350 = vmatpush.msrb.mxu0 %v1561_v4  ;;  %416 = vmatpush.msrb.mxu2 %v1616_v37 }
  0x11   :  { %286 = vmatpush.msra.mxu3 %v1622_v38  ;;  %152 = vmatpush.msra.mxu1 %v1628_v39 }
  0x12   :  { %478 = vmatpush.msra.mxu0 %v1539_v0  ;;  %417 = vmatpush.msrb.mxu2 %v1622_v38 }
  0x13   :  { %287 = vmatpush.msra.mxu3 %v1628_v39  ;;  %153 = vmatpush.msra.mxu1 %v1636_v40 }
  0x14   :  { %479 = vmatpush.msra.mxu0 %v1544_v1  ;;  %418 = vmatpush.msrb.mxu2 %v1628_v39 }
  0x15   :  { %288 = vmatpush.msra.mxu3 %v1636_v40  ;;  %154 = vmatpush.msra.mxu1 %v1647_v41 }
  0x16   :  { %480 = vmatpush.msra.mxu0 %v1550_v2  ;;  %419 = vmatpush.msrb.mxu2 %v1636_v40 }
  0x17   :  { %289 = vmatpush.msra.mxu3 %v1647_v41  ;;  %544 = vmatpush.msrb.mxu1 %v1590_v31 }
  0x18   :  { %481 = vmatpush.msra.mxu0 %v1561_v4  ;;  %420 = vmatpush.msrb.mxu2 %v1647_v41 }
  0x19   :  { %609 = vmatpush.msrb.mxu3 %v1539_v0  ;;  %545 = vmatpush.msrb.mxu1 %v1595_v32 }
  0x1b   :  { %610 = vmatpush.msrb.mxu3 %v1544_v1  ;;  %546 = vmatpush.msrb.mxu1 %v1602_v33 }
  0x1d   :  { %611 = vmatpush.msrb.mxu3 %v1550_v2  ;;  %547 = vmatpush.msrb.mxu1 %v1616_v37 }
  0x1f   :  { %612 = vmatpush.msrb.mxu3 %v1561_v4  ;;  %548 = vmatpush.msrb.mxu1 %v1622_v38 }
  0x21   :  { %549 = vmatpush.msrb.mxu1 %v1628_v39 }
  0x23   :  { %550 = vmatpush.msrb.mxu1 %v1636_v40 }
  0x25   :  { %551 = vmatpush.msrb.mxu1 %v1647_v41 }
  0x86   :  { %v73_v7 = vpop.f32.mrf.mxu0 }
  0x87   :  { %v76_v8 = vadd.f32 %v73_v7, %v47_v6 }
  0x89   :  { %1278 = vtanh.f32 %v76_v8  ;;  %v1229_v11 = vmul.f32 -1.442695, %v76_v8 }
  0x8b   :  { %1280 = vpow2.f32 %v1229_v11 }
  0x8f   :  { %v1279_v9 = vpop.eup %1278 }
  0x90   :  { %103 = vrot.lane.b32.xlu0 %v1279_v9, %s1484_s14 }
  0x91   :  { %v1281_v12 = vpop.eup %1280 }
  0x92   :  { %v80_v13 = vadd.f32 1.0, %v1281_v12 }
  0x94   :  { %1282 = vrcp.f32 %v80_v13  ;;  %v92_v19 = vand.u32 2147483648, %v80_v13  ;;  %vm86_vm3 = vweird.f32 %v80_v13  ;;  %v90_v20 = vand.u32 2147483647, %v80_v13 }
  0x96   :  { %v93_v22 = vor.u32 1.1754944e-38, %v92_v19  ;;  %vm91_vm5 = vcmp.eq.f32.partialorder %v90_v20, 8.507059e+37 }
  0x98   :  { %98 = vrot.lane.b32.xlu0 %v40_v10, %s1485_s15 }
  0x9a   :  { %v1283_v14 = vpop.eup %1282 }
  0x9b   :  { %v82_v15 = vmul.f32 %v1283_v14, %v80_v13  ;;  %vm87_vm2 = vweird.f32 %v1283_v14 }
  0x9c   :  { %vm88_vm4 = vmor %vm86_vm3, %vm87_vm2 }
  0x9d   :  { %v83_v16 = vsub.f32 1.0, %v82_v15 }
  0x9f   :  { %v84_v17 = vmul.f32 %v1283_v14, %v83_v16 }
  0xa1   :  { %v85_v18 = vadd.f32 %v1283_v14, %v84_v17 }
  0xa3   :  { %v89_v21 = vsel %vm88_vm4, %v1283_v14, %v85_v18 }
  0xa4   :  { %v94_v24 = vsel %vm91_vm5, %v93_v22, %v89_v21 }
 0x102   :  { %v104_v23 = vpop.permute.xlu0 %103 }
 0x103   :  { %v106_v25 = vmul.f32 %v104_v23, %v94_v24 }
 0x105   :  { %108 = vrot.lane.b32.xlu1 %v106_v25, %s1485_s15 }
 0x10a   :  { %v99_v26 = vpop.permute.xlu0 %98 }
 0x10b   :  { %v101_v27 = vmul.f32 %v99_v26, %v94_v24 }
 0x177   :  { %v109_v28 = vpop.permute.xlu1 %108 }
 0x178   :  { %v1583_v29 = vadd.f32 %v109_v28, %v101_v27 }
 0x17a   :  { %1284 = vtanh.f32 %v1583_v29 }
 0x180   :  { %v1285_v30 = vpop.eup %1284 }
 0x181   :  { %114 = vrot.lane.b32.xlu1 %v1285_v30, %s1484_s14 }
 0x1f3   :  { %v115_v34 = vpop.permute.xlu1 %114 }
 0x1f4   :  { %v117_v35 = vmul.f32 %v115_v34, %v94_v24 }
 0x1f6   :  { %119 = vrot.lane.b32.xlu2 %v117_v35, %s1485_s15 }
 0x1fe   :  { %123 = vrot.lane.b32.xlu2 %v39_v36, %s1485_s15 }
 0x206   :  { %180 = vrot.lane.b32.xlu2 %v42_v42, %s1485_s15 }
 0x250   :  { %v120_v43 = vpop.permute.xlu2 %119 }
 0x251   :  { %1233 = vmatmul.msk.f32.vlgmr.msra.gmra.mxu2 %vm52_vm1, %v120_v43 }
 0x252   :  { %740 = vmatpush.msra.mxu2 %v1539_v0 }
 0x254   :  { %741 = vmatpush.msra.mxu2 %v1544_v1 }
 0x256   :  { %742 = vmatpush.msra.mxu2 %v1550_v2 }
 0x258   :  { %v124_v44 = vpop.permute.xlu2 %123  ;;  %743 = vmatpush.msra.mxu2 %v1561_v4 }
 0x259   :  { %v126_v45 = vsel %vm52_vm1, %v120_v43, %v124_v44 }
 0x25a   :  { %1230 = vmatmul.msk.f32.vlgmr.msra.gmra.mxu1 %vm135_vm6, %v126_v45 }
 0x25b   :  { %871 = vmatpush.msra.mxu1 %v1539_v0 }
 0x25d   :  { %872 = vmatpush.msra.mxu1 %v1544_v1 }
 0x25f   :  { %873 = vmatpush.msra.mxu1 %v1550_v2 }
 0x260   :  { %v181_v24 = vpop.permute.xlu2 %180 }
 0x261   :  { %874 = vmatpush.msra.mxu1 %v1561_v4 }
 0x2d4   :  { %v221_v47 = vpop.f32.mrf.mxu2 }
 0x2d5   :  { %v224_v49 = vadd.f32 %v1232_v46, %v221_v47 }
 0x2d7   :  { %1286 = vtanh.f32 %v224_v49  ;;  %v156_v50 = vpop.f32.mrf.mxu1  ;;  %v1234_v54 = vmul.f32 -1.442695, %v224_v49  ;;  %v1237_v49 = vld [vmem:[%s1915_s0 + $0x4] sm:$0x3] }
 0x2d8   :  { %v157_v51 = vadd.f32 %v1683_v48, %v156_v50 }
 0x2da   :  { %1288 = vtanh.f32 %v157_v51  ;;  %v1231_v55 = vmul.f32 -1.442695, %v157_v51 }
 0x2db   :  { %1290 = vpow2.f32 %v1234_v54 }
 0x2dc   :  { %1292 = vpow2.f32 %v1231_v55 }
 0x2dd   :  { %v1287_v52 = vpop.eup %1286 }
 0x2de   :  { %247 = vrot.lane.b32.xlu1 %v1287_v52, %s1484_s14 }
 0x2e0   :  { %v1289_v53 = vpop.eup %1288 }
 0x2e1   :  { %185 = vrot.lane.b32.xlu0 %v1289_v53, %s1484_s14  ;;  %v1291_v56 = vpop.eup %1290 }
 0x2e2   :  { %v1293_v57 = vpop.eup %1292  ;;  %v228_v58 = vadd.f32 1.0, %v1291_v56 }
 0x2e3   :  { %v162_v59 = vadd.f32 1.0, %v1293_v57 }
 0x2e4   :  { %1294 = vrcp.f32 %v228_v58  ;;  %v240_v9 = vand.u32 2147483648, %v228_v58  ;;  %vm234_vm8 = vweird.f32 %v228_v58  ;;  %v238_v10 = vand.u32 2147483647, %v228_v58 }
 0x2e5   :  { %1296 = vrcp.f32 %v162_v59  ;;  %v174_v12 = vand.u32 2147483648, %v162_v59  ;;  %vm168_vm11 = vweird.f32 %v162_v59  ;;  %v172_v14 = vand.u32 2147483647, %v162_v59 }
 0x2e6   :  { %v241_v15 = vor.u32 1.1754944e-38, %v240_v9  ;;  %vm239_vm13 = vcmp.eq.f32.partialorder %v238_v10, 8.507059e+37 }
 0x2e7   :  { %v175_v19 = vor.u32 1.1754944e-38, %v174_v12  ;;  %vm173_vm14 = vcmp.eq.f32.partialorder %v172_v14, 8.507059e+37 }
 0x2ea   :  { %v1295_v60 = vpop.eup %1294 }
 0x2eb   :  { %v1297_v61 = vpop.eup %1296  ;;  %v230_v62 = vmul.f32 %v1295_v60, %v228_v58  ;;  %vm235_vm7 = vweird.f32 %v1295_v60 }
 0x2ec   :  { %v164_v63 = vmul.f32 %v1297_v61, %v162_v59  ;;  %vm169_vm9 = vweird.f32 %v1297_v61  ;;  %vm236_vm10 = vmor %vm234_vm8, %vm235_vm7 }
 0x2ed   :  { %v231_v3 = vsub.f32 1.0, %v230_v62  ;;  %vm170_vm12 = vmor %vm168_vm11, %vm169_vm9 }
 0x2ee   :  { %v165_v5 = vsub.f32 1.0, %v164_v63 }
 0x2ef   :  { %v232_v6 = vmul.f32 %v1295_v60, %v231_v3 }
 0x2f0   :  { %v166_v7 = vmul.f32 %v1297_v61, %v165_v5 }
 0x2f1   :  { %v233_v8 = vadd.f32 %v1295_v60, %v232_v6 }
 0x2f2   :  { %v167_v11 = vadd.f32 %v1297_v61, %v166_v7 }
 0x2f3   :  { %v237_v13 = vsel %vm236_vm10, %v1295_v60, %v233_v8 }
 0x2f4   :  { %v171_v16 = vsel %vm170_vm12, %v1297_v61, %v167_v11  ;;  %v242_v18 = vsel %vm239_vm13, %v241_v15, %v237_v13 }
 0x2f5   :  { %v176_v21 = vsel %vm173_vm14, %v175_v19, %v171_v16  ;;  %v245_v25 = vmul.f32 %v242_v18, %v1583_v29 }
 0x2f6   :  { %v183_v28 = vmul.f32 %v181_v24, %v176_v21 }
 0x350   :  { %v248_v17 = vpop.permute.xlu1 %247 }
 0x351   :  { %v250_v20 = vmul.f32 %v248_v17, %v242_v18 }
 0x353   :  { %252 = vrot.lane.b32.xlu1 %v250_v20, %s1485_s15  ;;  %v186_v22 = vpop.permute.xlu0 %185 }
 0x354   :  { %v188_v23 = vmul.f32 %v186_v22, %v176_v21 }
 0x356   :  { %190 = vrot.lane.b32.xlu0 %v188_v23, %s1485_s15 }
 0x3c5   :  { %v253_v26 = vpop.permute.xlu1 %252 }
 0x3c6   :  { %v1691_v27 = vadd.f32 %v253_v26, %v245_v25 }
 0x3c8   :  { %1298 = vtanh.f32 %v1691_v27  ;;  %v191_v30 = vpop.permute.xlu0 %190 }
 0x3c9   :  { %v1694_v34 = vadd.f32 %v191_v30, %v183_v28 }
 0x3cb   :  { %1300 = vtanh.f32 %v1694_v34 }
 0x3ce   :  { %v1299_v35 = vpop.eup %1298 }
 0x3cf   :  { %258 = vrot.lane.b32.xlu0 %v1299_v35, %s1484_s14 }
 0x3d1   :  { %v1301_v36 = vpop.eup %1300 }
 0x3d2   :  { %196 = vrot.lane.b32.xlu2 %v1301_v36, %s1484_s14 }
 0x42c   :  { %v197_v42 = vpop.permute.xlu2 %196 }
 0x42d   :  { %v199_v43 = vmul.f32 %v197_v42, %v176_v21 }
 0x42f   :  { %267 = vrot.lane.b32.xlu2 %v199_v43, %s1484_s14 }
 0x441   :  { %v259_v29 = vpop.permute.xlu0 %258 }
 0x442   :  { %v261_v44 = vmul.f32 %v259_v29, %v242_v18 }
 0x444   :  { %263 = vrot.lane.b32.xlu1 %v261_v44, %s1485_s15 }
 0x489   :  { %v268_v45 = vpop.permute.xlu2 %267 }
 0x4b6   :  { %v264_v46 = vpop.permute.xlu1 %263 }
 0x4b7   :  { %1238 = vmatmul.msk.f32.vlgmr.msrb.gmra.mxu0 %vm52_vm1, %v264_v46  ;;  %v270_v47 = vsel %vm52_vm1, %v264_v46, %v268_v45 }
 0x4b8   :  { %1235 = vmatmul.msk.f32.vlgmr.msra.gmra.mxu3 %vm135_vm6, %v270_v47  ;;  %675 = vmatpush.msrb.mxu0 %v1590_v31 }
 0x4b9   :  { %806 = vmatpush.msra.mxu3 %v1590_v31 }
 0x4ba   :  { %676 = vmatpush.msrb.mxu0 %v1595_v32 }
 0x4bb   :  { %807 = vmatpush.msra.mxu3 %v1595_v32 }
 0x4bc   :  { %677 = vmatpush.msrb.mxu0 %v1602_v33 }
 0x4bd   :  { %808 = vmatpush.msra.mxu3 %v1602_v33 }
 0x4be   :  { %678 = vmatpush.msrb.mxu0 %v1616_v37 }
 0x4bf   :  { %809 = vmatpush.msra.mxu3 %v1616_v37 }
 0x4c0   :  { %679 = vmatpush.msrb.mxu0 %v1622_v38 }
 0x4c1   :  { %810 = vmatpush.msra.mxu3 %v1622_v38 }
 0x4c2   :  { %680 = vmatpush.msrb.mxu0 %v1628_v39 }
 0x4c3   :  { %811 = vmatpush.msra.mxu3 %v1628_v39 }
 0x4c4   :  { %681 = vmatpush.msrb.mxu0 %v1636_v40 }
 0x4c5   :  { %812 = vmatpush.msra.mxu3 %v1636_v40 }
 0x4c6   :  { %682 = vmatpush.msrb.mxu0 %v1647_v41 }
 0x4c7   :  { %813 = vmatpush.msra.mxu3 %v1647_v41 }
 0x534   :  { %v352_v50 = vpop.f32.mrf.mxu0 }
 0x535   :  { %v355_v51 = vadd.f32 %v1237_v49, %v352_v50 }
 0x537   :  { %1302 = vtanh.f32 %v355_v51  ;;  %v1239_v56 = vmul.f32 -1.442695, %v355_v51 }
 0x53b   :  { %v291_v52 = vpop.f32.mrf.mxu3 }
 0x53c   :  { %v292_v53 = vadd.f32 %v1683_v48, %v291_v52 }
 0x53d   :  { %v1303_v54 = vpop.eup %1302 }
 0x53e   :  { %1304 = vtanh.f32 %v292_v53  ;;  %378 = vrot.lane.b32.xlu0 %v1303_v54, %s1484_s14  ;;  %v1236_v57 = vmul.f32 -1.442695, %v292_v53 }
 0x53f   :  { %1306 = vpow2.f32 %v1239_v56 }
 0x540   :  { %1308 = vpow2.f32 %v1236_v57 }
 0x544   :  { %v1305_v55 = vpop.eup %1304 }
 0x545   :  { %316 = vrot.lane.b32.xlu1 %v1305_v55, %s1484_s14  ;;  %v1307_v58 = vpop.eup %1306 }
 0x546   :  { %v359_v59 = vadd.f32 1.0, %v1307_v58  ;;  %v1309_v60 = vpop.eup %1308 }
 0x547   :  { %v297_v61 = vadd.f32 1.0, %v1309_v60 }
 0x548   :  { %1310 = vrcp.f32 %v359_v59  ;;  %v371_v10 = vand.u32 2147483648, %v359_v59  ;;  %vm365_vm2 = vweird.f32 %v359_v59  ;;  %v369_v11 = vand.u32 2147483647, %v359_v59 }
 0x549   :  { %1312 = vrcp.f32 %v297_v61  ;;  %v309_v19 = vand.u32 2147483648, %v297_v61  ;;  %vm303_vm7 = vweird.f32 %v297_v61  ;;  %v307_v20 = vand.u32 2147483647, %v297_v61 }
 0x54a   :  { %v372_v14 = vor.u32 1.1754944e-38, %v371_v10  ;;  %vm370_vm4 = vcmp.eq.f32.partialorder %v369_v11, 8.507059e+37 }
 0x54b   :  { %v310_v22 = vor.u32 1.1754944e-38, %v309_v19  ;;  %vm308_vm9 = vcmp.eq.f32.partialorder %v307_v20, 8.507059e+37 }
 0x54e   :  { %v1311_v62 = vpop.eup %1310 }
 0x54f   :  { %v361_v63 = vmul.f32 %v1311_v62, %v359_v59  ;;  %v1313_v3 = vpop.eup %1312  ;;  %vm366_vm15 = vweird.f32 %v1311_v62 }
 0x550   :  { %v299_v6 = vmul.f32 %v1313_v3, %v297_v61  ;;  %vm367_vm3 = vmor %vm365_vm2, %vm366_vm15  ;;  %vm304_vm5 = vweird.f32 %v1313_v3 }
 0x551   :  { %v362_v5 = vsub.f32 1.0, %v361_v63  ;;  %vm305_vm8 = vmor %vm303_vm7, %vm304_vm5 }
 0x552   :  { %v300_v8 = vsub.f32 1.0, %v299_v6 }
 0x553   :  { %v363_v7 = vmul.f32 %v1311_v62, %v362_v5 }
 0x554   :  { %v301_v12 = vmul.f32 %v1313_v3, %v300_v8 }
 0x555   :  { %v364_v9 = vadd.f32 %v1311_v62, %v363_v7 }
 0x556   :  { %v302_v17 = vadd.f32 %v1313_v3, %v301_v12 }
 0x557   :  { %v368_v13 = vsel %vm367_vm3, %v1311_v62, %v364_v9 }
 0x558   :  { %v373_v16 = vsel %vm370_vm4, %v372_v14, %v368_v13  ;;  %v306_v21 = vsel %vm305_vm8, %v1313_v3, %v302_v17 }
 0x559   :  { %v311_v24 = vsel %vm308_vm9, %v310_v22, %v306_v21  ;;  %v376_v26 = vmul.f32 %v373_v16, %v1691_v27 }
 0x55a   :  { %v314_v36 = vmul.f32 %v311_v24, %v1694_v34 }
 0x5b0   :  { %v379_v15 = vpop.permute.xlu0 %378 }
 0x5b1   :  { %v381_v18 = vmul.f32 %v379_v15, %v373_v16 }
 0x5b3   :  { %383 = vrot.lane.b32.xlu2 %v381_v18, %s1485_s15 }
 0x5b7   :  { %v317_v23 = vpop.permute.xlu1 %316 }
 0x5b8   :  { %v319_v25 = vmul.f32 %v317_v23, %v311_v24 }
 0x5ba   :  { %321 = vrot.lane.b32.xlu0 %v319_v25, %s1485_s15 }
 0x60d   :  { %v384_v28 = vpop.permute.xlu2 %383 }
 0x60e   :  { %v1729_v30 = vadd.f32 %v384_v28, %v376_v26 }
 0x610   :  { %1314 = vtanh.f32 %v1729_v30 }
 0x616   :  { %v1315_v35 = vpop.eup %1314 }
 0x617   :  { %389 = vrot.lane.b32.xlu1 %v1315_v35, %s1484_s14 }
 0x62c   :  { %v322_v42 = vpop.permute.xlu0 %321 }
 0x62d   :  { %v1734_v43 = vadd.f32 %v322_v42, %v314_v36 }
 0x62f   :  { %1316 = vtanh.f32 %v1734_v43 }
 0x635   :  { %v1317_v29 = vpop.eup %1316 }
 0x636   :  { %327 = vrot.lane.b32.xlu2 %v1317_v29, %s1484_s14 }
 0x689   :  { %v390_v44 = vpop.permute.xlu1 %389 }
 0x68a   :  { %v392_v27 = vmul.f32 %v390_v44, %v373_v16 }
 0x68c   :  { %394 = vrot.lane.b32.xlu0 %v392_v27, %s1485_s15 }
 0x690   :  { %v328_v45 = vpop.permute.xlu2 %327 }
 0x691   :  { %v330_v46 = vmul.f32 %v328_v45, %v311_v24 }
 0x693   :  { %398 = vrot.lane.b32.xlu1 %v330_v46, %s1484_s14 }
 0x6fe   :  { %v395_v47 = vpop.permute.xlu0 %394 }
 0x6ff   :  { %1243 = vmatmul.msk.f32.vlgmr.msra.gmra.mxu0 %vm52_vm1, %v395_v47 }
 0x700   :  { %1002 = vmatpush.msra.mxu0 %v1539_v0  ;;  %v1242_v0 = vld [vmem:[%s1915_s0 + $0x6] sm:$0x3] }
 0x702   :  { %1003 = vmatpush.msra.mxu0 %v1544_v1 }
 0x704   :  { %1004 = vmatpush.msra.mxu0 %v1550_v2 }
 0x705   :  { %v399_v34 = vpop.permute.xlu1 %398 }
 0x706   :  { %v401_v49 = vsel %vm52_vm1, %v395_v47, %v399_v34  ;;  %1005 = vmatpush.msra.mxu0 %v1561_v4  ;;  %v1247_v47 = vld [vmem:[%s1915_s0 + $0x8] sm:$0x3] }
 0x707   :  { %1240 = vmatmul.msk.f32.vlgmr.msrb.gmra.mxu2 %vm135_vm6, %v401_v49 }
 0x708   :  { %937 = vmatpush.msrb.mxu2 %v1590_v31 }
 0x70a   :  { %938 = vmatpush.msrb.mxu2 %v1595_v32 }
 0x70c   :  { %939 = vmatpush.msrb.mxu2 %v1602_v33 }
 0x70e   :  { %940 = vmatpush.msrb.mxu2 %v1616_v37 }
 0x710   :  { %941 = vmatpush.msrb.mxu2 %v1622_v38 }
 0x712   :  { %942 = vmatpush.msrb.mxu2 %v1628_v39 }
 0x714   :  { %943 = vmatpush.msrb.mxu2 %v1636_v40 }
 0x716   :  { %944 = vmatpush.msrb.mxu2 %v1647_v41 }
 0x77c   :  { %v483_v1 = vpop.f32.mrf.mxu0 }
 0x77d   :  { %v486_v2 = vadd.f32 %v1242_v0, %v483_v1 }
 0x77f   :  { %1318 = vtanh.f32 %v486_v2  ;;  %v1244_v53 = vmul.f32 -1.442695, %v486_v2 }
 0x785   :  { %v1319_v4 = vpop.eup %1318 }
 0x786   :  { %509 = vrot.lane.b32.xlu2 %v1319_v4, %s1484_s14 }
 0x78a   :  { %v422_v50 = vpop.f32.mrf.mxu2 }
 0x78b   :  { %v423_v51 = vadd.f32 %v1683_v48, %v422_v50 }
 0x78d   :  { %1320 = vtanh.f32 %v423_v51  ;;  %v1241_v60 = vmul.f32 -1.442695, %v423_v51 }
 0x78e   :  { %1322 = vpow2.f32 %v1244_v53 }
 0x793   :  { %v1321_v52 = vpop.eup %1320 }
 0x794   :  { %447 = vrot.lane.b32.xlu0 %v1321_v52, %s1484_s14  ;;  %v1323_v54 = vpop.eup %1322 }
 0x795   :  { %v490_v55 = vadd.f32 1.0, %v1323_v54 }
 0x797   :  { %1324 = vrcp.f32 %v490_v55  ;;  %v502_v62 = vand.u32 2147483648, %v490_v55  ;;  %vm496_vm11 = vweird.f32 %v490_v55  ;;  %v500_v63 = vand.u32 2147483647, %v490_v55 }
 0x798   :  { %1326 = vpow2.f32 %v1241_v60 }
 0x799   :  { %v503_v5 = vor.u32 1.1754944e-38, %v502_v62  ;;  %vm501_vm13 = vcmp.eq.f32.partialorder %v500_v63, 8.507059e+37 }
 0x79d   :  { %v1325_v56 = vpop.eup %1324 }
 0x79e   :  { %v492_v57 = vmul.f32 %v1325_v56, %v490_v55  ;;  %vm497_vm10 = vweird.f32 %v1325_v56  ;;  %v1327_v9 = vpop.eup %1326 }
 0x79f   :  { %vm498_vm12 = vmor %vm496_vm11, %vm497_vm10  ;;  %v428_v10 = vadd.f32 1.0, %v1327_v9 }
 0x7a0   :  { %v493_v58 = vsub.f32 1.0, %v492_v57 }
 0x7a1   :  { %1328 = vrcp.f32 %v428_v10  ;;  %v440_v16 = vand.u32 2147483648, %v428_v10  ;;  %vm434_vm15 = vweird.f32 %v428_v10  ;;  %v438_v17 = vand.u32 2147483647, %v428_v10 }
 0x7a2   :  { %v494_v59 = vmul.f32 %v1325_v56, %v493_v58 }
 0x7a3   :  { %v441_v19 = vor.u32 1.1754944e-38, %v440_v16  ;;  %vm439_vm3 = vcmp.eq.f32.partialorder %v438_v17, 8.507059e+37 }
 0x7a4   :  { %v495_v61 = vadd.f32 %v1325_v56, %v494_v59 }
 0x7a6   :  { %v499_v3 = vsel %vm498_vm12, %v1325_v56, %v495_v61 }
 0x7a7   :  { %v504_v6 = vsel %vm501_vm13, %v503_v5, %v499_v3  ;;  %v1329_v11 = vpop.eup %1328 }
 0x7a8   :  { %v430_v12 = vmul.f32 %v1329_v11, %v428_v10  ;;  %vm435_vm14 = vweird.f32 %v1329_v11  ;;  %v507_v23 = vmul.f32 %v504_v6, %v1729_v30 }
 0x7a9   :  { %vm436_vm2 = vmor %vm434_vm15, %vm435_vm14 }
 0x7aa   :  { %v431_v13 = vsub.f32 1.0, %v430_v12 }
 0x7ac   :  { %v432_v14 = vmul.f32 %v1329_v11, %v431_v13 }
 0x7ae   :  { %v433_v15 = vadd.f32 %v1329_v11, %v432_v14 }
 0x7b0   :  { %v437_v18 = vsel %vm436_vm2, %v1329_v11, %v433_v15 }
 0x7b1   :  { %v442_v21 = vsel %vm439_vm3, %v441_v19, %v437_v18 }
 0x7b2   :  { %v445_v28 = vmul.f32 %v442_v21, %v1734_v43 }
 0x7e0   :  { %v510_v7 = vpop.permute.xlu2 %509 }
 0x7e1   :  { %v512_v8 = vmul.f32 %v510_v7, %v504_v6 }
 0x7e3   :  { %514 = vrot.lane.b32.xlu1 %v512_v8, %s1485_s15 }
 0x806   :  { %v448_v20 = vpop.permute.xlu0 %447 }
 0x807   :  { %v450_v22 = vmul.f32 %v448_v20, %v442_v21 }
 0x809   :  { %452 = vrot.lane.b32.xlu2 %v450_v22, %s1485_s15 }
 0x855   :  { %v515_v24 = vpop.permute.xlu1 %514 }
 0x856   :  { %v1764_v25 = vadd.f32 %v515_v24, %v507_v23 }
 0x858   :  { %1330 = vtanh.f32 %v1764_v25 }
 0x85e   :  { %v1331_v26 = vpop.eup %1330 }
 0x85f   :  { %520 = vrot.lane.b32.xlu0 %v1331_v26, %s1484_s14 }
 0x863   :  { %v453_v35 = vpop.permute.xlu2 %452 }
 0x864   :  { %v1769_v36 = vadd.f32 %v453_v35, %v445_v28  ;;  %v1252_v28 = vld [vmem:[%s1915_s0 + $0xa] sm:$0x3] }
 0x866   :  { %1332 = vtanh.f32 %v1769_v36 }
 0x86c   :  { %v1333_v42 = vpop.eup %1332 }
 0x86d   :  { %458 = vrot.lane.b32.xlu1 %v1333_v42, %s1484_s14 }
 0x8d1   :  { %v521_v29 = vpop.permute.xlu0 %520 }
 0x8d2   :  { %v523_v30 = vmul.f32 %v521_v29, %v504_v6 }
 0x8d4   :  { %525 = vrot.lane.b32.xlu2 %v523_v30, %s1485_s15 }
 0x8df   :  { %v459_v44 = vpop.permute.xlu1 %458 }
 0x8e0   :  { %v461_v27 = vmul.f32 %v459_v44, %v442_v21 }
 0x8e2   :  { %529 = vrot.lane.b32.xlu0 %v461_v27, %s1484_s14 }
 0x92e   :  { %v526_v45 = vpop.permute.xlu2 %525 }
 0x92f   :  { %1248 = vmatmul.msk.f32.vlgmr.msrb.gmra.mxu3 %vm52_vm1, %v526_v45 }
 0x954   :  { %v530_v43 = vpop.permute.xlu0 %529 }
 0x955   :  { %v532_v46 = vsel %vm52_vm1, %v526_v45, %v530_v43 }
 0x956   :  { %1245 = vmatmul.msk.f32.vlgmr.msrb.gmra.mxu1 %vm135_vm6, %v532_v46 }
 0x957   :  { %1068 = vmatpush.msrb.mxu1 %v1590_v31 }
 0x959   :  { %1069 = vmatpush.msrb.mxu1 %v1595_v32 }
 0x95b   :  { %1070 = vmatpush.msrb.mxu1 %v1602_v33 }
 0x95d   :  { %1071 = vmatpush.msrb.mxu1 %v1616_v37 }
 0x95f   :  { %1072 = vmatpush.msrb.mxu1 %v1622_v38 }
 0x961   :  { %1073 = vmatpush.msrb.mxu1 %v1628_v39 }
 0x963   :  { %1074 = vmatpush.msrb.mxu1 %v1636_v40 }
 0x965   :  { %1075 = vmatpush.msrb.mxu1 %v1647_v41 }
 0x9b2   :  { %v614_v34 = vpop.f32.mrf.mxu3 }
 0x9b3   :  { %v617_v31 = vadd.f32 %v1247_v47, %v614_v34 }
 0x9b5   :  { %1334 = vtanh.f32 %v617_v31  ;;  %v1249_v39 = vmul.f32 -1.442695, %v617_v31 }
 0x9bb   :  { %v1335_v32 = vpop.eup %1334 }
 0x9bc   :  { %640 = vrot.lane.b32.xlu1 %v1335_v32, %s1484_s14 }
 0x9d3   :  { %v553_v33 = vpop.f32.mrf.mxu1 }
 0x9d4   :  { %v554_v37 = vadd.f32 %v1683_v48, %v553_v33 }
 0x9d6   :  { %1336 = vtanh.f32 %v554_v37  ;;  %v1246_v40 = vmul.f32 -1.442695, %v554_v37 }
 0x9d7   :  { %1338 = vpow2.f32 %v1249_v39 }
 0x9d8   :  { %1340 = vpow2.f32 %v1246_v40 }
 0x9dc   :  { %v1337_v38 = vpop.eup %1336 }
 0x9dd   :  { %578 = vrot.lane.b32.xlu2 %v1337_v38, %s1484_s14  ;;  %v1339_v41 = vpop.eup %1338 }
 0x9de   :  { %v621_v49 = vadd.f32 1.0, %v1339_v41  ;;  %v1341_v0 = vpop.eup %1340 }
 0x9df   :  { %v559_v1 = vadd.f32 1.0, %v1341_v0 }
 0x9e0   :  { %1342 = vrcp.f32 %v621_v49  ;;  %v633_v55 = vand.u32 2147483648, %v621_v49  ;;  %vm627_vm5 = vweird.f32 %v621_v49  ;;  %v631_v57 = vand.u32 2147483647, %v621_v49 }
 0x9e1   :  { %1344 = vrcp.f32 %v559_v1  ;;  %v571_v5 = vand.u32 2147483648, %v559_v1  ;;  %vm565_vm10 = vweird.f32 %v559_v1  ;;  %v569_v6 = vand.u32 2147483647, %v559_v1 }
 0x9e2   :  { %v634_v59 = vor.u32 1.1754944e-38, %v633_v55  ;;  %vm632_vm8 = vcmp.eq.f32.partialorder %v631_v57, 8.507059e+37 }
 0x9e3   :  { %v572_v8 = vor.u32 1.1754944e-38, %v571_v5  ;;  %vm570_vm12 = vcmp.eq.f32.partialorder %v569_v6, 8.507059e+37 }
 0x9e6   :  { %v1343_v2 = vpop.eup %1342 }
 0x9e7   :  { %v623_v4 = vmul.f32 %v1343_v2, %v621_v49  ;;  %v1345_v51 = vpop.eup %1344  ;;  %vm628_vm4 = vweird.f32 %v1343_v2 }
 0x9e8   :  { %v561_v53 = vmul.f32 %v1345_v51, %v559_v1  ;;  %vm629_vm7 = vmor %vm627_vm5, %vm628_vm4  ;;  %vm566_vm9 = vweird.f32 %v1345_v51 }
 0x9e9   :  { %v624_v50 = vsub.f32 1.0, %v623_v4  ;;  %vm567_vm11 = vmor %vm565_vm10, %vm566_vm9 }
 0x9ea   :  { %v562_v56 = vsub.f32 1.0, %v561_v53 }
 0x9eb   :  { %v625_v52 = vmul.f32 %v1343_v2, %v624_v50 }
 0x9ec   :  { %v563_v60 = vmul.f32 %v1345_v51, %v562_v56 }
 0x9ed   :  { %v626_v54 = vadd.f32 %v1343_v2, %v625_v52 }
 0x9ee   :  { %v564_v3 = vadd.f32 %v1345_v51, %v563_v60 }
 0x9ef   :  { %v630_v58 = vsel %vm629_vm7, %v1343_v2, %v626_v54 }
 0x9f0   :  { %v635_v62 = vsel %vm632_vm8, %v634_v59, %v630_v58  ;;  %v568_v7 = vsel %vm567_vm11, %v1345_v51, %v564_v3 }
 0x9f1   :  { %v573_v10 = vsel %vm570_vm12, %v572_v8, %v568_v7  ;;  %v638_v12 = vmul.f32 %v635_v62, %v1764_v25 }
 0x9f2   :  { %v576_v15 = vmul.f32 %v573_v10, %v1769_v36 }
 0xa2e   :  { %v641_v61 = vpop.permute.xlu1 %640 }
 0xa2f   :  { %v643_v63 = vmul.f32 %v641_v61, %v635_v62 }
 0xa31   :  { %645 = vrot.lane.b32.xlu0 %v643_v63, %s1485_s15 }
 0xa37   :  { %v579_v9 = vpop.permute.xlu2 %578 }
 0xa38   :  { %v581_v11 = vmul.f32 %v579_v9, %v573_v10 }
 0xa3a   :  { %583 = vrot.lane.b32.xlu1 %v581_v11, %s1485_s15 }
 0xaa3   :  { %v646_v13 = vpop.permute.xlu0 %645 }
 0xaa4   :  { %v1795_v14 = vadd.f32 %v646_v13, %v638_v12 }
 0xaa6   :  { %1346 = vtanh.f32 %v1795_v14 }
 0xaac   :  { %v1347_v16 = vpop.eup %1346  ;;  %v584_v17 = vpop.permute.xlu1 %583 }
 0xaad   :  { %v1799_v18 = vadd.f32 %v584_v17, %v576_v15  ;;  %651 = vrot.lane.b32.xlu2 %v1347_v16, %s1484_s14  ;;  %v1257_v16 = vld [vmem:[%s1915_s0 + $0xc] sm:$0x3] }
 0xaaf   :  { %1348 = vtanh.f32 %v1799_v18 }
 0xab5   :  { %v1349_v19 = vpop.eup %1348 }
 0xab6   :  { %589 = vrot.lane.b32.xlu0 %v1349_v19, %s1484_s14 }
 0xb07   :  { %v652_v20 = vpop.permute.xlu2 %651 }
 0xb08   :  { %v654_v21 = vmul.f32 %v652_v20, %v635_v62 }
 0xb0a   :  { %656 = vrot.lane.b32.xlu1 %v654_v21, %s1485_s15 }
 0xb28   :  { %v590_v22 = vpop.permute.xlu0 %589 }
 0xb29   :  { %v592_v23 = vmul.f32 %v590_v22, %v573_v10 }
 0xb2b   :  { %660 = vrot.lane.b32.xlu2 %v592_v23, %s1484_s14 }
 0xb7c   :  { %v657_v24 = vpop.permute.xlu1 %656 }
 0xb7d   :  { %1253 = vmatmul.msk.f32.vlgmr.msra.gmra.mxu2 %vm52_vm1, %v657_v24 }
 0xb85   :  { %v661_v25 = vpop.permute.xlu2 %660 }
 0xb86   :  { %v663_v26 = vsel %vm52_vm1, %v657_v24, %v661_v25 }
 0xb87   :  { %1250 = vmatmul.msk.f32.vlgmr.msrb.gmra.mxu0 %vm135_vm6, %v663_v26 }
 0xc00   :  { %v745_v35 = vpop.f32.mrf.mxu2 }
 0xc01   :  { %v748_v36 = vadd.f32 %v1252_v28, %v745_v35 }
 0xc03   :  { %1350 = vtanh.f32 %v748_v36  ;;  %v1254_v27 = vmul.f32 -1.442695, %v748_v36 }
 0xc04   :  { %v684_v42 = vpop.f32.mrf.mxu0 }
 0xc05   :  { %v685_v29 = vadd.f32 %v1683_v48, %v684_v42 }
 0xc07   :  { %1352 = vtanh.f32 %v685_v29  ;;  %v1251_v45 = vmul.f32 -1.442695, %v685_v29 }
 0xc08   :  { %1354 = vpow2.f32 %v1254_v27 }
 0xc09   :  { %v1351_v30 = vpop.eup %1350  ;;  %1356 = vpow2.f32 %v1251_v45 }
 0xc0a   :  { %771 = vrot.lane.b32.xlu1 %v1351_v30, %s1484_s14 }
 0xc0d   :  { %v1353_v44 = vpop.eup %1352 }
 0xc0e   :  { %709 = vrot.lane.b32.xlu0 %v1353_v44, %s1484_s14  ;;  %v1355_v43 = vpop.eup %1354 }
 0xc0f   :  { %v752_v46 = vadd.f32 1.0, %v1355_v43  ;;  %v1357_v47 = vpop.eup %1356 }
 0xc10   :  { %v690_v34 = vadd.f32 1.0, %v1357_v47 }
 0xc11   :  { %1358 = vrcp.f32 %v752_v46  ;;  %v764_v0 = vand.u32 2147483648, %v752_v46  ;;  %vm758_vm14 = vweird.f32 %v752_v46  ;;  %v762_v1 = vand.u32 2147483647, %v752_v46 }
 0xc12   :  { %1360 = vrcp.f32 %v690_v34  ;;  %v702_v51 = vand.u32 2147483648, %v690_v34  ;;  %vm696_vm4 = vweird.f32 %v690_v34  ;;  %v700_v52 = vand.u32 2147483647, %v690_v34 }
 0xc13   :  { %v765_v50 = vor.u32 1.1754944e-38, %v764_v0  ;;  %vm763_vm3 = vcmp.eq.f32.partialorder %v762_v1, 8.507059e+37 }
 0xc14   :  { %v703_v57 = vor.u32 1.1754944e-38, %v702_v51  ;;  %vm701_vm7 = vcmp.eq.f32.partialorder %v700_v52, 8.507059e+37 }
 0xc17   :  { %v1359_v31 = vpop.eup %1358 }
 0xc18   :  { %v754_v32 = vmul.f32 %v1359_v31, %v752_v46  ;;  %v1361_v33 = vpop.eup %1360  ;;  %vm759_vm13 = vweird.f32 %v1359_v31 }
 0xc19   :  { %v692_v38 = vmul.f32 %v1361_v33, %v690_v34  ;;  %vm760_vm15 = vmor %vm758_vm14, %vm759_vm13  ;;  %vm697_vm2 = vweird.f32 %v1361_v33 }
 0xc1a   :  { %v755_v37 = vsub.f32 1.0, %v754_v32  ;;  %vm698_vm5 = vmor %vm696_vm4, %vm697_vm2 }
 0xc1b   :  { %v693_v40 = vsub.f32 1.0, %v692_v38 }
 0xc1c   :  { %v756_v39 = vmul.f32 %v1359_v31, %v755_v37 }
 0xc1d   :  { %v694_v49 = vmul.f32 %v1361_v33, %v693_v40 }
 0xc1e   :  { %v757_v41 = vadd.f32 %v1359_v31, %v756_v39 }
 0xc1f   :  { %v695_v4 = vadd.f32 %v1361_v33, %v694_v49 }
 0xc20   :  { %v761_v2 = vsel %vm760_vm15, %v1359_v31, %v757_v41 }
 0xc21   :  { %v766_v54 = vsel %vm763_vm3, %v765_v50, %v761_v2  ;;  %v699_v56 = vsel %vm698_vm5, %v1361_v33, %v695_v4 }
 0xc22   :  { %v704_v59 = vsel %vm701_vm7, %v703_v57, %v699_v56  ;;  %v769_v5 = vmul.f32 %v766_v54, %v1795_v14 }
 0xc23   :  { %v707_v61 = vmul.f32 %v704_v59, %v1799_v18 }
 0xc7c   :  { %v772_v53 = vpop.permute.xlu1 %771 }
 0xc7d   :  { %v774_v55 = vmul.f32 %v772_v53, %v766_v54 }
 0xc7f   :  { %776 = vrot.lane.b32.xlu0 %v774_v55, %s1485_s15 }
 0xc80   :  { %v710_v58 = vpop.permute.xlu0 %709 }
 0xc81   :  { %v712_v60 = vmul.f32 %v710_v58, %v704_v59 }
 0xc83   :  { %714 = vrot.lane.b32.xlu2 %v712_v60, %s1485_s15 }
 0xcdd   :  { %v715_v62 = vpop.permute.xlu2 %714 }
 0xcde   :  { %v1818_v63 = vadd.f32 %v715_v62, %v707_v61 }
 0xce0   :  { %1362 = vtanh.f32 %v1818_v63 }
 0xce6   :  { %v1363_v3 = vpop.eup %1362 }
 0xce7   :  { %720 = vrot.lane.b32.xlu1 %v1363_v3, %s1484_s14 }
 0xcf1   :  { %v777_v6 = vpop.permute.xlu0 %776 }
 0xcf2   :  { %v1823_v7 = vadd.f32 %v777_v6, %v769_v5  ;;  %v1262_v5 = vld [vmem:[%s1915_s0 + $0xe] sm:$0x3] }
 0xcf4   :  { %1364 = vtanh.f32 %v1823_v7 }
 0xcfa   :  { %v1365_v8 = vpop.eup %1364 }
 0xcfb   :  { %782 = vrot.lane.b32.xlu2 %v1365_v8, %s1484_s14 }
 0xd55   :  { %v783_v9 = vpop.permute.xlu2 %782 }
 0xd56   :  { %v785_v10 = vmul.f32 %v783_v9, %v766_v54 }
 0xd58   :  { %787 = vrot.lane.b32.xlu0 %v785_v10, %s1485_s15 }
 0xd59   :  { %v721_v11 = vpop.permute.xlu1 %720 }
 0xd5a   :  { %v723_v12 = vmul.f32 %v721_v11, %v704_v59 }
 0xd5c   :  { %791 = vrot.lane.b32.xlu1 %v723_v12, %s1484_s14 }
 0xdca   :  { %v788_v13 = vpop.permute.xlu0 %787 }
 0xdcb   :  { %1258 = vmatmul.msk.f32.vlgmr.msra.gmra.mxu1 %vm52_vm1, %v788_v13 }
 0xdce   :  { %v792_v14 = vpop.permute.xlu1 %791 }
 0xdcf   :  { %v794_v15 = vsel %vm52_vm1, %v788_v13, %v792_v14 }
 0xdd0   :  { %1255 = vmatmul.msk.f32.vlgmr.msra.gmra.mxu3 %vm135_vm6, %v794_v15 }
 0xe48   :  { %v876_v17 = vpop.f32.mrf.mxu1 }
 0xe49   :  { %v879_v18 = vadd.f32 %v1257_v16, %v876_v17 }
 0xe4b   :  { %1366 = vtanh.f32 %v879_v18  ;;  %v1259_v25 = vmul.f32 -1.442695, %v879_v18 }
 0xe51   :  { %v1367_v19 = vpop.eup %1366 }
 0xe52   :  { %902 = vrot.lane.b32.xlu0 %v1367_v19, %s1484_s14 }
 0xe53   :  { %v815_v20 = vpop.f32.mrf.mxu3 }
 0xe54   :  { %v816_v21 = vadd.f32 %v1683_v48, %v815_v20 }
 0xe56   :  { %1368 = vtanh.f32 %v816_v21  ;;  %v1256_v23 = vmul.f32 -1.442695, %v816_v21 }
 0xe58   :  { %1370 = vpow2.f32 %v1256_v23 }
 0xe59   :  { %1372 = vpow2.f32 %v1259_v25 }
 0xe5c   :  { %v1369_v22 = vpop.eup %1368 }
 0xe5d   :  { %840 = vrot.lane.b32.xlu2 %v1369_v22, %s1484_s14 }
 0xe5e   :  { %v1371_v24 = vpop.eup %1370 }
 0xe5f   :  { %v821_v26 = vadd.f32 1.0, %v1371_v24  ;;  %v1373_v28 = vpop.eup %1372 }
 0xe60   :  { %v883_v36 = vadd.f32 1.0, %v1373_v28 }
 0xe61   :  { %1374 = vrcp.f32 %v821_v26  ;;  %v833_v43 = vand.u32 2147483648, %v821_v26  ;;  %vm827_vm9 = vweird.f32 %v821_v26  ;;  %v831_v46 = vand.u32 2147483647, %v821_v26 }
 0xe62   :  { %1376 = vrcp.f32 %v883_v36  ;;  %v895_v40 = vand.u32 2147483648, %v883_v36  ;;  %vm889_vm13 = vweird.f32 %v883_v36  ;;  %v893_v41 = vand.u32 2147483647, %v883_v36 }
 0xe63   :  { %v834_v31 = vor.u32 1.1754944e-38, %v833_v43  ;;  %vm832_vm11 = vcmp.eq.f32.partialorder %v831_v46, 8.507059e+37 }
 0xe64   :  { %v896_v0 = vor.u32 1.1754944e-38, %v895_v40  ;;  %vm894_vm15 = vcmp.eq.f32.partialorder %v893_v41, 8.507059e+37 }
 0xe67   :  { %v1375_v35 = vpop.eup %1374 }
 0xe68   :  { %v823_v42 = vmul.f32 %v1375_v35, %v821_v26  ;;  %v1377_v44 = vpop.eup %1376  ;;  %vm828_vm8 = vweird.f32 %v1375_v35 }
 0xe69   :  { %v885_v45 = vmul.f32 %v1377_v44, %v883_v36  ;;  %vm829_vm10 = vmor %vm827_vm9, %vm828_vm8  ;;  %vm890_vm12 = vweird.f32 %v1377_v44 }
 0xe6a   :  { %v824_v29 = vsub.f32 1.0, %v823_v42  ;;  %vm891_vm14 = vmor %vm889_vm13, %vm890_vm12 }
 0xe6b   :  { %v886_v34 = vsub.f32 1.0, %v885_v45 }
 0xe6c   :  { %v825_v30 = vmul.f32 %v1375_v35, %v824_v29 }
 0xe6d   :  { %v887_v38 = vmul.f32 %v1377_v44, %v886_v34 }
 0xe6e   :  { %v826_v27 = vadd.f32 %v1375_v35, %v825_v30 }
 0xe6f   :  { %v888_v39 = vadd.f32 %v1377_v44, %v887_v38 }
 0xe70   :  { %v830_v47 = vsel %vm829_vm10, %v1375_v35, %v826_v27 }
 0xe71   :  { %v835_v33 = vsel %vm832_vm11, %v834_v31, %v830_v47  ;;  %v892_v49 = vsel %vm891_vm14, %v1377_v44, %v888_v39 }
 0xe72   :  { %v897_v2 = vsel %vm894_vm15, %v896_v0, %v892_v49  ;;  %v838_v54 = vmul.f32 %v835_v33, %v1818_v63 }
 0xe73   :  { %v900_v50 = vmul.f32 %v897_v2, %v1823_v7 }
 0xeb7   :  { %v841_v32 = vpop.permute.xlu2 %840 }
 0xeb8   :  { %v843_v37 = vmul.f32 %v841_v32, %v835_v33 }
 0xeba   :  { %845 = vrot.lane.b32.xlu1 %v843_v37, %s1485_s15 }
 0xec4   :  { %v903_v1 = vpop.permute.xlu0 %902 }
 0xec5   :  { %v905_v4 = vmul.f32 %v903_v1, %v897_v2 }
 0xec7   :  { %907 = vrot.lane.b32.xlu2 %v905_v4, %s1485_s15 }
 0xf21   :  { %v908_v51 = vpop.permute.xlu2 %907 }
 0xf22   :  { %v1841_v52 = vadd.f32 %v908_v51, %v900_v50 }
 0xf24   :  { %1378 = vtanh.f32 %v1841_v52 }
 0xf2a   :  { %v1379_v53 = vpop.eup %1378 }
 0xf2b   :  { %913 = vrot.lane.b32.xlu1 %v1379_v53, %s1484_s14 }
 0xf2c   :  { %v846_v55 = vpop.permute.xlu1 %845 }
 0xf2d   :  { %v1846_v56 = vadd.f32 %v846_v55, %v838_v54  ;;  %v1406_v55 = vld [vmem:[%s1918_s3] ss:$0 sm:$0xff]  ;;  %s1486_s3 = smov 96  }
 0xf2f   :  { %1380 = vtanh.f32 %v1846_v56 }
 0xf35   :  { %v1381_v57 = vpop.eup %1380 }
 0xf36   :  { %851 = vrot.lane.b32.xlu0 %v1381_v57, %s1484_s14 }
 0xf9d   :  { %v914_v58 = vpop.permute.xlu1 %913 }
 0xf9e   :  { %v916_v59 = vmul.f32 %v914_v58, %v897_v2 }
 0xfa0   :  { %918 = vrot.lane.b32.xlu2 %v916_v59, %s1485_s15 }
 0xfa8   :  { %v852_v60 = vpop.permute.xlu0 %851 }
 0xfa9   :  { %v854_v61 = vmul.f32 %v852_v60, %v835_v33 }
 0xfab   :  { %922 = vrot.lane.b32.xlu0 %v854_v61, %s1484_s14 }
 0xffa   :  { %v919_v62 = vpop.permute.xlu2 %918 }
 0xffb   :  { %1263 = vmatmul.msk.f32.vlgmr.msra.gmra.mxu0 %vm52_vm1, %v919_v62 }
0x101d   :  { %v923_v63 = vpop.permute.xlu0 %922 }
0x101e   :  { %v925_v3 = vsel %vm52_vm1, %v919_v62, %v923_v63 }
0x101f   :  { %1260 = vmatmul.msk.f32.vlgmr.msrb.gmra.mxu2 %vm135_vm6, %v925_v3 }
0x1078   :  { %v1007_v6 = vpop.f32.mrf.mxu0 }
0x1079   :  { %v1010_v7 = vadd.f32 %v1262_v5, %v1007_v6 }
0x107b   :  { %1382 = vtanh.f32 %v1010_v7  ;;  %v1264_v12 = vmul.f32 -1.442695, %v1010_v7 }
0x1081   :  { %v1383_v8 = vpop.eup %1382 }
0x1082   :  { %1033 = vrot.lane.b32.xlu2 %v1383_v8, %s1484_s14 }
0x10a2   :  { %v946_v9 = vpop.f32.mrf.mxu2 }
0x10a3   :  { %v947_v10 = vadd.f32 %v1683_v48, %v946_v9 }
0x10a5   :  { %1384 = vtanh.f32 %v947_v10  ;;  %v1261_v26 = vmul.f32 -1.442695, %v947_v10 }
0x10a6   :  { %1386 = vpow2.f32 %v1264_v12 }
0x10ab   :  { %v1385_v11 = vpop.eup %1384 }
0x10ac   :  { %971 = vrot.lane.b32.xlu1 %v1385_v11, %s1484_s14  ;;  %v1387_v13 = vpop.eup %1386 }
0x10ad   :  { %v1014_v14 = vadd.f32 1.0, %v1387_v13 }
0x10af   :  { %1388 = vrcp.f32 %v1014_v14  ;;  %v1026_v20 = vand.u32 2147483648, %v1014_v14  ;;  %vm1020_vm3 = vweird.f32 %v1014_v14  ;;  %v1024_v21 = vand.u32 2147483647, %v1014_v14 }
0x10b0   :  { %1390 = vpow2.f32 %v1261_v26 }
0x10b1   :  { %v1027_v22 = vor.u32 1.1754944e-38, %v1026_v20  ;;  %vm1025_vm5 = vcmp.eq.f32.partialorder %v1024_v21, 8.507059e+37  ;;  %v1139_v20 = vld [vmem:[%s1919_s4 + $0x10] sm:$0xff]  ;;  %v1138_v21 = vld [vmem:[%s1919_s4 + $0x8] sm:$0xff] }
0x10b5   :  { %v1389_v15 = vpop.eup %1388 }
0x10b6   :  { %v1016_v16 = vmul.f32 %v1389_v15, %v1014_v14  ;;  %vm1021_vm2 = vweird.f32 %v1389_v15  ;;  %v1391_v28 = vpop.eup %1390 }
0x10b7   :  { %vm1022_vm4 = vmor %vm1020_vm3, %vm1021_vm2  ;;  %v952_v35 = vadd.f32 1.0, %v1391_v28 }
0x10b8   :  { %v1017_v17 = vsub.f32 1.0, %v1016_v16 }
0x10b9   :  { %1392 = vrcp.f32 %v952_v35  ;;  %v964_v27 = vand.u32 2147483648, %v952_v35  ;;  %vm958_vm8 = vweird.f32 %v952_v35  ;;  %v962_v45 = vand.u32 2147483647, %v952_v35 }
0x10ba   :  { %v1018_v18 = vmul.f32 %v1389_v15, %v1017_v17 }
0x10bb   :  { %v965_v46 = vor.u32 1.1754944e-38, %v964_v27  ;;  %vm963_vm10 = vcmp.eq.f32.partialorder %v962_v45, 8.507059e+37 }
0x10bc   :  { %v1019_v19 = vadd.f32 %v1389_v15, %v1018_v18 }
0x10be   :  { %v1023_v48 = vsel %vm1022_vm4, %v1389_v15, %v1019_v19  ;;  %v1140_v19 = vld [vmem:[%s1919_s4 + $0x18] sm:$0xff] }
0x10bf   :  { %v1028_v24 = vsel %vm1025_vm5, %v1027_v22, %v1023_v48  ;;  %v1393_v36 = vpop.eup %1392  ;;  %1159 = vmatpush.msrb.mxu3 %v1140_v19  ;;  %v1137_v48 = vld [vmem:[%s1919_s4] sm:$0xff] }
0x10c0   :  { %v954_v42 = vmul.f32 %v1393_v36, %v952_v35  ;;  %vm959_vm7 = vweird.f32 %v1393_v36  ;;  %v1031_v32 = vmul.f32 %v1028_v24, %v1841_v52  ;;  %v1277_v35 = vld [vmem:[%s1920_s5] ss:$0 sm:$0xff] }
0x10c1   :  { %vm960_vm9 = vmor %vm958_vm8, %vm959_vm7  ;;  %1160 = vmatpush.msrb.mxu3 %v1139_v20 }
0x10c2   :  { %v955_v29 = vsub.f32 1.0, %v954_v42 }
0x10c3   :  { %1161 = vmatpush.msrb.mxu3 %v1138_v21 }
0x10c4   :  { %v956_v30 = vmul.f32 %v1393_v36, %v955_v29 }
0x10c5   :  { %1162 = vmatpush.msrb.mxu3 %v1137_v48 }
0x10c6   :  { %v957_v44 = vadd.f32 %v1393_v36, %v956_v30 }
0x10c8   :  { %v961_v43 = vsel %vm960_vm9, %v1393_v36, %v957_v44 }
0x10c9   :  { %v966_v34 = vsel %vm963_vm10, %v965_v46, %v961_v43 }
0x10ca   :  { %v969_v39 = vmul.f32 %v966_v34, %v1846_v56 }
0x10dc   :  { %v1034_v23 = vpop.permute.xlu2 %1033 }
0x10dd   :  { %v1036_v25 = vmul.f32 %v1034_v23, %v1028_v24 }
0x10df   :  { %1038 = vrot.lane.b32.xlu1 %v1036_v25, %s1485_s15 }
0x111e   :  { %v972_v47 = vpop.permute.xlu1 %971 }
0x111f   :  { %v974_v31 = vmul.f32 %v972_v47, %v966_v34 }
0x1121   :  { %976 = vrot.lane.b32.xlu0 %v974_v31, %s1485_s15 }
0x1151   :  { %v1039_v33 = vpop.permute.xlu1 %1038 }
0x1152   :  { %v1041_v37 = vadd.f32 %v1039_v33, %v1031_v32 }
0x1154   :  { %1394 = vtanh.f32 %v1041_v37 }
0x115a   :  { %v1395_v38 = vpop.eup %1394 }
0x115b   :  { %1044 = vrot.lane.b32.xlu0 %v1395_v38, %s1484_s14 }
0x1193   :  { %v977_v40 = vpop.permute.xlu0 %976 }
0x1194   :  { %v979_v41 = vadd.f32 %v977_v40, %v969_v39 }
0x1196   :  { %1396 = vtanh.f32 %v979_v41 }
0x119c   :  { %v1397_v49 = vpop.eup %1396 }
0x119d   :  { %982 = vrot.lane.b32.xlu2 %v1397_v49, %s1484_s14 }
0x11cd   :  { %v1045_v0 = vpop.permute.xlu0 %1044 }
0x11ce   :  { %v1047_v1 = vmul.f32 %v1045_v0, %v1028_v24 }
0x11d0   :  { %1049 = vrot.lane.b32.xlu1 %v1047_v1, %s1485_s15 }
0x11f7   :  { %v983_v2 = vpop.permute.xlu2 %982 }
0x11f8   :  { %v985_v4 = vmul.f32 %v983_v2, %v966_v34 }
0x11fa   :  { %1053 = vrot.lane.b32.xlu2 %v985_v4, %s1484_s14 }
0x1242   :  { %v1050_v50 = vpop.permute.xlu1 %1049 }
0x1243   :  { %1118 = vst.msk [vmem:[#allocation2] sm:$0x3] %vm32_vm0, %v1050_v50 }
0x124a   :  { %v1169_v51 = vld [vmem:[#allocation2] sm:$0x3] }
0x124b   :  { %1171 = vst.msk [vmem:[#allocation6] sm:$0x3] %vm32_vm0, %v1169_v51 }
0x1254   :  { %v1054_v52 = vpop.permute.xlu2 %1053 }
0x1255   :  { %v1056_v53 = vsel %vm52_vm1, %v1050_v50, %v1054_v52 }
0x1256   :  { %1265 = vmatmul.msk.f32.vlgmr.msrb.gmra.mxu1 %vm135_vm6, %v1056_v53 }
0x12d3   :  { %v1077_v54 = vpop.f32.mrf.mxu1 }
0x12d4   :  { %v1078_v56 = vadd.f32 %v1406_v55, %v1077_v54 }
0x12d6   :  { %1398 = vtanh.f32 %v1078_v56  ;;  %v1266_v58 = vmul.f32 -1.442695, %v1078_v56 }
0x12d8   :  { %1400 = vpow2.f32 %v1266_v58 }
0x12dc   :  { %v1399_v57 = vpop.eup %1398 }
0x12dd   :  { %1102 = vrot.lane.b32.xlu0 %v1399_v57, %s1484_s14 }
0x12de   :  { %v1401_v59 = vpop.eup %1400 }
0x12df   :  { %v1083_v60 = vadd.f32 1.0, %v1401_v59 }
0x12e1   :  { %1402 = vrcp.f32 %v1083_v60  ;;  %v1095_v6 = vand.u32 2147483648, %v1083_v60  ;;  %vm1089_vm11 = vweird.f32 %v1083_v60  ;;  %v1093_v7 = vand.u32 2147483647, %v1083_v60 }
0x12e3   :  { %v1096_v9 = vor.u32 1.1754944e-38, %v1095_v6  ;;  %vm1094_vm13 = vcmp.eq.f32.partialorder %v1093_v7, 8.507059e+37 }
0x12e7   :  { %v1403_v61 = vpop.eup %1402 }
0x12e8   :  { %v1085_v62 = vmul.f32 %v1403_v61, %v1083_v60  ;;  %vm1090_vm6 = vweird.f32 %v1403_v61 }
0x12e9   :  { %vm1091_vm12 = vmor %vm1089_vm11, %vm1090_vm6 }
0x12ea   :  { %v1086_v63 = vsub.f32 1.0, %v1085_v62 }
0x12ec   :  { %v1087_v3 = vmul.f32 %v1403_v61, %v1086_v63 }
0x12ee   :  { %v1088_v5 = vadd.f32 %v1403_v61, %v1087_v3 }
0x12f0   :  { %v1092_v8 = vsel %vm1091_vm12, %v1403_v61, %v1088_v5 }
0x12f1   :  { %v1097_v11 = vsel %vm1094_vm13, %v1096_v9, %v1092_v8 }
0x12f2   :  { %v1100_v13 = vmul.f32 %v1097_v11, %v979_v41 }
0x134f   :  { %v1103_v10 = vpop.permute.xlu0 %1102 }
0x1350   :  { %v1105_v12 = vmul.f32 %v1103_v10, %v1097_v11 }
0x1352   :  { %1107 = vrot.lane.b32.xlu1 %v1105_v12, %s1485_s15 }
0x135a   :  { %1120 = vrot.lane.b32.xlu1 %v1041_v37, %s1486_s3 }
0x13c4   :  { %v1108_v14 = vpop.permute.xlu1 %1107 }
0x13c5   :  { %v1110_v15 = vadd.f32 %v1108_v14, %v1100_v13 }
0x13c7   :  { %1404 = vtanh.f32 %v1110_v15 }
0x13cc   :  { %v1121_v16 = vpop.permute.xlu1 %1120 }
0x13cd   :  { %v1405_v17 = vpop.eup %1404  ;;  %1123 = vst.msk [vmem:[#allocation3] sm:$0x3] %vm32_vm0, %v1121_v16 }
0x13ce   :  { %1113 = vrot.lane.b32.xlu2 %v1405_v17, %s1484_s14 }
0x13d4   :  { %v1173_v18 = vld [vmem:[#allocation3] sm:$0x3] }
0x13d5   :  { %1175 = vst.msk [vmem:[#allocation8] sm:$0x3] %vm32_vm0, %v1173_v18 }
0x13d6   :  { %1130 = vrot.lane.b32.xlu2 %v1110_v15, %s1486_s3 }
0x1428   :  { %v1114_v22 = vpop.permute.xlu2 %1113 }
0x1429   :  { %v1116_v23 = vmul.f32 %v1114_v22, %v1097_v11 }
0x142b   :  { %1125 = vrot.lane.b32.xlu0 %v1116_v23, %s1485_s15 }
0x1430   :  { %v1131_v24 = vpop.permute.xlu2 %1130 }
0x1431   :  { %1133 = vst.msk [vmem:[#allocation3 + $0x2] sm:$0x3] %vm32_vm0, %v1131_v24 }
0x1438   :  { %v1174_v25 = vld [vmem:[#allocation3 + $0x2] sm:$0x3] }
0x1439   :  { %1176 = vst.msk [vmem:[#allocation8 + $0x2] sm:$0x3] %vm32_vm0, %v1174_v25 }
0x149d   :  { %v1126_v26 = vpop.permute.xlu0 %1125 }
0x149e   :  { %1128 = vst.msk [vmem:[#allocation2 + $0x2] sm:$0x3] %vm32_vm0, %v1126_v26  ;;  %1267 = vmatmul.msk.f32.vlgmr.msrb.gmra.mxu3 %vm52_vm1, %v1126_v26 }
0x14a5   :  { %v1170_v28 = vld [vmem:[#allocation2 + $0x2] sm:$0x3] }
0x14a6   :  { %1172 = vst.msk [vmem:[#allocation6 + $0x2] sm:$0x3] %vm32_vm0, %v1170_v28  ;;  %vm1167_vm0 = vcmask 25600  }
0x14a7   :  { %1200 = dma.vmem_to_hbm [thread:$0]  %s1193_s12, 64, %s1195_s13, [#allocation7], %s1485_s15, %s1485_s15, %s1488_s16  }
0x14a8   :  { %1213 = dma.vmem_to_hbm [thread:$0]  %s1206_s21, 64, %s1208_s19, [#allocation7], %s1485_s15, %s1485_s15, %s1488_s16  }
0x1521   :  { %v1164_v36 = vpop.f32.mrf.mxu3 }
0x1522   :  { %v1165_v42 = vadd.f32 %v1277_v35, %v1164_v36 }
0x1524   :  { %1168 = vst.msk [vmem:[#allocation4] sm:$0x3] %vm1167_vm0, %v1165_v42 }
0x1525   :  { %1187 = dma.vmem_to_hbm [thread:$0]  %s1183_s24, 32, %s1185_s26, [#allocation5]  }
0x1526   :  { %1479 = dma.done.wait [#allocation5], 32  }
0x1527   :  { %1480 = vsyncadd [#allocation5], 4294967264 }
0x1528   :  { %1481 = dma.done.wait [#allocation7], 128  }
0x1529   :  { %1482 = vsyncadd [#allocation7], 4294967168 }
0x152a   :  { %1226 = vsyncpa [#allocation5], 1 }
0x152b   :  { %1227 = vsyncpa [#allocation7], 1 }

</bundles_post_ra>
